<compile_context>
chip_gen: v7x
topology: tpu7x:2x2x1
jax: 0.10.0
libtpu: 0.0.40
codegen_flags: <defaults>
</compile_context>

<pallas_src>
import math

import jax
import jax.numpy as jnp
from jax.experimental import pallas as pl
from jax.experimental.pallas import tpu as pltpu

# ---------------- small synthetic ViT config ----------------
IN_CH = 3
IMG = 32
PATCH = 16
N_PATCH = (IMG // PATCH) ** 2          # 4
TOKENS = N_PATCH + 1                   # 5 (CLS + patches)
T_PAD = 8                              # tokens padded to a sublane multiple
HIDDEN = 32
HEADS = 2
HEAD_DIM = HIDDEN // HEADS             # 16
MLP = 64
LAYERS = 2
CLASSES = 10                           # cifar10 head of the finetuned backbone
LN_EPS = 1e-12                         # HF ViT layer_norm_eps
PATCH_DIM = IN_CH * PATCH * PATCH      # 768
SCALE = 1.0 / math.sqrt(HEAD_DIM)
NEG_INF = -1e30


# ---------------- the fused kernel ----------------
def _vit_fused_kernel(
    patches_ref, patch_w_ref, token_add_ref,
    ln1_g_ref, ln1_b_ref, wqkv_ref, bqkv_ref, wo_ref, bo_ref,
    ln2_g_ref, ln2_b_ref, w1_ref, b1_ref, w2_ref, b2_ref,
    lnf_g_ref, lnf_b_ref, head_w_ref, head_b_ref,
    out_ref,
):
    f32 = jnp.float32
    bf16 = jnp.bfloat16

    def mm(x, w):
        # bf16 operands for the MXU, f32 accumulation.
        return jnp.dot(x.astype(bf16), w.astype(bf16), preferred_element_type=f32)

    def layer_norm(x, g, b):
        mu = jnp.mean(x, axis=-1, keepdims=True)
        xc = x - mu
        var = jnp.mean(xc * xc, axis=-1, keepdims=True)
        return xc * jax.lax.rsqrt(var + LN_EPS) * g + b

    # ---- patch embedding (+ CLS token, positional embeddings, conv bias) ----
    # patches_ref block: (1, T_PAD, PATCH_DIM); row 0 and rows TOKENS.. are zero
    # so the CLS / padding rows get no patch contribution.  token_add holds
    # cls+pos[0] in row 0, patch_bias+pos[t] in rows 1..N_PATCH, zeros after.
    patches = patches_ref[0]                                   # (T_PAD, PATCH_DIM)
    h = mm(patches, patch_w_ref[...]) + token_add_ref[...]     # (T_PAD, HIDDEN) f32

    # key mask for padded token columns (hoisted out of the loops).
    key_mask = jax.lax.broadcasted_iota(jnp.int32, (T_PAD, T_PAD), 1) < TOKENS

    # ---- transformer encoder layers (static unroll) ----
    for l in range(LAYERS):
        ln1 = layer_norm(h, ln1_g_ref[l], ln1_b_ref[l])
        qkv = mm(ln1, wqkv_ref[l]) + bqkv_ref[l]               # (T_PAD, 3*HIDDEN)
        wo_l = wo_ref[l]                                        # (HIDDEN, HIDDEN)

        attn_out = jnp.zeros((T_PAD, HIDDEN), f32)
        for hd in range(HEADS):
            lo = hd * HEAD_DIM
            q = qkv[:, lo:lo + HEAD_DIM]                        # lane slices
            k = qkv[:, HIDDEN + lo:HIDDEN + lo + HEAD_DIM]
            v = qkv[:, 2 * HIDDEN + lo:2 * HIDDEN + lo + HEAD_DIM]

            s = jnp.einsum("qd,kd->qk", q.astype(bf16), k.astype(bf16),
                           preferred_element_type=f32) * SCALE  # (T_PAD, T_PAD)
            s = jnp.where(key_mask, s, NEG_INF)
            m = jnp.max(s, axis=-1, keepdims=True)
            p = jnp.exp(s - m)
            denom = jnp.sum(p, axis=-1, keepdims=True)
            p = p * pl.reciprocal(denom, approx=True)           # EUP vrcp
            o = mm(p, v)                                        # (T_PAD, HEAD_DIM)
            # head merge folded into the output projection: sum_h o_h @ Wo[h-rows]
            attn_out = attn_out + mm(o, wo_l[lo:lo + HEAD_DIM, :])

        h = h + attn_out + bo_ref[l]                            # residual + proj bias

        ln2 = layer_norm(h, ln2_g_ref[l], ln2_b_ref[l])
        # TODO(synk): HF ViT uses exact erf-GELU; tanh approximation used here.
        m1 = jax.nn.gelu(mm(ln2, w1_ref[l]) + b1_ref[l], approximate=True)
        h = h + mm(m1, w2_ref[l]) + b2_ref[l]                   # MLP residual

    # ---- final LayerNorm + classifier + sigmoid on the CLS row only ----
    cls = layer_norm(h[0:1, :], lnf_g_ref[...], lnf_b_ref[...])  # (1, HIDDEN)
    logits = mm(cls, head_w_ref[...]) + head_b_ref[...]          # (1, CLASSES)
    out_ref[0] = jax.nn.sigmoid(logits)


# ---------------- pallas_call wrapper ----------------
def _full_spec(shape):
    n = len(shape)
    return pl.BlockSpec(shape, lambda b, n=n: (0,) * n)  # constant -> stays resident


def _extract_patches(x):
    """(B, C, H, W) -> (B, T_PAD, PATCH_DIM) with zero rows for CLS/padding."""
    B = x.shape[0]
    nh = IMG // PATCH
    p = x.reshape(B, IN_CH, nh, PATCH, nh, PATCH)
    p = p.transpose(0, 2, 4, 1, 3, 5).reshape(B, N_PATCH, PATCH_DIM)
    cls_slot = jnp.zeros((B, 1, PATCH_DIM), x.dtype)
    tail = jnp.zeros((B, T_PAD - TOKENS, PATCH_DIM), x.dtype)
    return jnp.concatenate([cls_slot, p, tail], axis=1)


def finetuned_vit_forward(packed, x):
    """x: (B, C, H, W) NCHW float32 -> (B, CLASSES) sigmoid probabilities."""
    B = x.shape[0]
    patches = _extract_patches(x)                               # (B, T_PAD, 768)

    in_specs = [pl.BlockSpec((1, T_PAD, PATCH_DIM), lambda b: (b, 0, 0))]
    in_specs += [_full_spec(w.shape) for w in packed]

    out = pl.pallas_call(
        _vit_fused_kernel,
        out_shape=jax.ShapeDtypeStruct((B, 1, CLASSES), jnp.float32),
        grid=(B,),
        in_specs=in_specs,
        out_specs=pl.BlockSpec((1, 1, CLASSES), lambda b: (b, 0, 0)),
        compiler_params=pltpu.CompilerParams(
            dimension_semantics=("parallel",)),   # v7x: shard batch across TCs
    )(patches, *packed)
    return out.reshape(B, CLASSES)


# ---------------- parameters ----------------
def _w(key, shape, scale=0.02):
    return scale * jax.random.normal(key, shape, dtype=jnp.float32)


def init_params(key):
    keys = iter(jax.random.split(key, 8 + LAYERS * 8))
    p = {}
    p["patch_w"] = _w(next(keys), (PATCH_DIM, HIDDEN))          # conv as matmul
    p["patch_b"] = jnp.zeros((1, HIDDEN), jnp.float32)
    p["cls"] = _w(next(keys), (1, 1, HIDDEN))
    p["pos"] = _w(next(keys), (1, TOKENS, HIDDEN))
    p["layers"] = []
    for _ in range(LAYERS):
        lyr = dict(
            ln1_g=jnp.ones((1, HIDDEN), jnp.float32),
            ln1_b=jnp.zeros((1, HIDDEN), jnp.float32),
            wq=_w(next(keys), (HIDDEN, HIDDEN)), bq=jnp.zeros((1, HIDDEN), jnp.float32),
            wk=_w(next(keys), (HIDDEN, HIDDEN)), bk=jnp.zeros((1, HIDDEN), jnp.float32),
            wv=_w(next(keys), (HIDDEN, HIDDEN)), bv=jnp.zeros((1, HIDDEN), jnp.float32),
            wo=_w(next(keys), (HIDDEN, HIDDEN)), bo=jnp.zeros((1, HIDDEN), jnp.float32),
            ln2_g=jnp.ones((1, HIDDEN), jnp.float32),
            ln2_b=jnp.zeros((1, HIDDEN), jnp.float32),
            w1=_w(next(keys), (HIDDEN, MLP)), b1=jnp.zeros((1, MLP), jnp.float32),
            w2=_w(next(keys), (MLP, HIDDEN)), b2=jnp.zeros((1, HIDDEN), jnp.float32),
        )
        p["layers"].append(lyr)
    p["lnf_g"] = jnp.ones((1, HIDDEN), jnp.float32)
    p["lnf_b"] = jnp.zeros((1, HIDDEN), jnp.float32)
    p["head_w"] = _w(next(keys), (HIDDEN, CLASSES))
    p["head_b"] = jnp.zeros((1, CLASSES), jnp.float32)
    return p


def pack_params(p):
    """Stack per-layer weights, fuse QKV, fold cls/pos/patch-bias into one
    additive table, cast MXU weights to bf16.  Order matches the kernel args."""
    bf16 = jnp.bfloat16

    def stack(name):
        return jnp.stack([lyr[name] for lyr in p["layers"]], axis=0)

    wqkv = jnp.stack(
        [jnp.concatenate([lyr["wq"], lyr["wk"], lyr["wv"]], axis=1)
         for lyr in p["layers"]], axis=0).astype(bf16)              # (L, H, 3H)
    bqkv = jnp.stack(
        [jnp.concatenate([lyr["bq"], lyr["bk"], lyr["bv"]], axis=1)
         for lyr in p["layers"]], axis=0)                            # (L, 1, 3H)

    cls_row = p["cls"].reshape(1, HIDDEN) + p["pos"][0, 0:1, :]      # CLS + pos0
    patch_rows = p["patch_b"] + p["pos"][0, 1:TOKENS, :]             # bias + pos
    pad_rows = jnp.zeros((T_PAD - TOKENS, HIDDEN), jnp.float32)
    token_add = jnp.concatenate([cls_row, patch_rows, pad_rows], axis=0)

    return (
        p["patch_w"].astype(bf16),
        token_add,
        stack("ln1_g"), stack("ln1_b"),
        wqkv, bqkv,
        stack("wo").astype(bf16), stack("bo"),
        stack("ln2_g"), stack("ln2_b"),
        stack("w1").astype(bf16), stack("b1"),
        stack("w2").astype(bf16), stack("b2"),
        p["lnf_g"], p["lnf_b"],
        p["head_w"].astype(bf16), p["head_b"],
    )


if __name__ == "__main__":
    key = jax.random.PRNGKey(0)
    k_params, k_x = jax.random.split(key)
    params = init_params(k_params)
    packed = pack_params(params)
    x = jax.random.normal(k_x, (2, IN_CH, IMG, IMG), dtype=jnp.float32)

    fwd = jax.jit(finetuned_vit_forward)
    out = jax.block_until_ready(fwd(packed, x))

    assert out.shape == (2, CLASSES), out.shape
    assert bool(jnp.all(jnp.isfinite(out)))
    assert bool(jnp.all((out > 0.0) & (out < 1.0)))
    print("KERNEL_OK")
</pallas_src>

<mosaic_0001>
module attributes {stable_mosaic.version = 11 : i64} {
  func.func @_vit_fused_kernel(%arg0: i32, %arg1: memref<1x8x768xf32, #tpu.memory_space<vmem>>, %arg2: memref<768x32xbf16, #tpu.memory_space<vmem>>, %arg3: memref<8x32xf32, #tpu.memory_space<vmem>>, %arg4: memref<2x1x32xf32, #tpu.memory_space<vmem>>, %arg5: memref<2x1x32xf32, #tpu.memory_space<vmem>>, %arg6: memref<2x32x96xbf16, #tpu.memory_space<vmem>>, %arg7: memref<2x1x96xf32, #tpu.memory_space<vmem>>, %arg8: memref<2x32x32xbf16, #tpu.memory_space<vmem>>, %arg9: memref<2x1x32xf32, #tpu.memory_space<vmem>>, %arg10: memref<2x1x32xf32, #tpu.memory_space<vmem>>, %arg11: memref<2x1x32xf32, #tpu.memory_space<vmem>>, %arg12: memref<2x32x64xbf16, #tpu.memory_space<vmem>>, %arg13: memref<2x1x64xf32, #tpu.memory_space<vmem>>, %arg14: memref<2x64x32xbf16, #tpu.memory_space<vmem>>, %arg15: memref<2x1x32xf32, #tpu.memory_space<vmem>>, %arg16: memref<1x32xf32, #tpu.memory_space<vmem>>, %arg17: memref<1x32xf32, #tpu.memory_space<vmem>>, %arg18: memref<32x10xbf16, #tpu.memory_space<vmem>>, %arg19: memref<1x10xf32, #tpu.memory_space<vmem>>, %arg20: memref<1x1x10xf32, #tpu.memory_space<vmem>>) attributes {dimension_semantics = [#tpu.dimension_semantics<parallel>], iteration_bounds = array<i64: 2>, scalar_prefetch = 0 : i64, scratch_operands = 0 : i64, tpu.core_type = #tpu.core_type<tc>, window_params = [{transform_indices = @transform_0, window_bounds = array<i64: 1, 8, 768>}, {pipeline_mode = #tpu.pipeline_mode<synchronous>, transform_indices = @transform_1, window_bounds = array<i64: 768, 32>}, {pipeline_mode = #tpu.pipeline_mode<synchronous>, transform_indices = @transform_2, window_bounds = array<i64: 8, 32>}, {pipeline_mode = #tpu.pipeline_mode<synchronous>, transform_indices = @transform_3, window_bounds = array<i64: 2, 1, 32>}, {pipeline_mode = #tpu.pipeline_mode<synchronous>, transform_indices = @transform_4, window_bounds = array<i64: 2, 1, 32>}, {pipeline_mode = #tpu.pipeline_mode<synchronous>, transform_indices = @transform_5, window_bounds = array<i64: 2, 32, 96>}, {pipeline_mode = #tpu.pipeline_mode<synchronous>, transform_indices = @transform_6, window_bounds = array<i64: 2, 1, 96>}, {pipeline_mode = #tpu.pipeline_mode<synchronous>, transform_indices = @transform_7, window_bounds = array<i64: 2, 32, 32>}, {pipeline_mode = #tpu.pipeline_mode<synchronous>, transform_indices = @transform_8, window_bounds = array<i64: 2, 1, 32>}, {pipeline_mode = #tpu.pipeline_mode<synchronous>, transform_indices = @transform_9, window_bounds = array<i64: 2, 1, 32>}, {pipeline_mode = #tpu.pipeline_mode<synchronous>, transform_indices = @transform_10, window_bounds = array<i64: 2, 1, 32>}, {pipeline_mode = #tpu.pipeline_mode<synchronous>, transform_indices = @transform_11, window_bounds = array<i64: 2, 32, 64>}, {pipeline_mode = #tpu.pipeline_mode<synchronous>, transform_indices = @transform_12, window_bounds = array<i64: 2, 1, 64>}, {pipeline_mode = #tpu.pipeline_mode<synchronous>, transform_indices = @transform_13, window_bounds = array<i64: 2, 64, 32>}, {pipeline_mode = #tpu.pipeline_mode<synchronous>, transform_indices = @transform_14, window_bounds = array<i64: 2, 1, 32>}, {pipeline_mode = #tpu.pipeline_mode<synchronous>, transform_indices = @transform_15, window_bounds = array<i64: 1, 32>}, {pipeline_mode = #tpu.pipeline_mode<synchronous>, transform_indices = @transform_16, window_bounds = array<i64: 1, 32>}, {pipeline_mode = #tpu.pipeline_mode<synchronous>, transform_indices = @transform_17, window_bounds = array<i64: 32, 10>}, {pipeline_mode = #tpu.pipeline_mode<synchronous>, transform_indices = @transform_18, window_bounds = array<i64: 1, 10>}, {transform_indices = @transform_19, window_bounds = array<i64: 1, 1, 10>}]} {
    %c0 = arith.constant 0 : index
    %c0_0 = arith.constant 0 : index
    %c0_1 = arith.constant 0 : index
    %0 = vector.load %arg1[%c0, %c0_0, %c0_1] : memref<1x8x768xf32, #tpu.memory_space<vmem>>, vector<1x8x768xf32>
    %1 = vector.shape_cast %0 : vector<1x8x768xf32> to vector<8x768xf32>
    %c0_2 = arith.constant 0 : index
    %c0_3 = arith.constant 0 : index
    %2 = vector.load %arg2[%c0_2, %c0_3] : memref<768x32xbf16, #tpu.memory_space<vmem>>, vector<768x32xbf16>
    %3 = arith.truncf %1 : vector<8x768xf32> to vector<8x768xbf16>
    %cst = arith.constant dense<0.000000e+00> : vector<8x32xf32>
    %4 = tpu.matmul %3, %2, %cst {dimension_numbers = #tpu.dot_dimension_numbers<[1], [0], [0], [1], [0, 0, 1, 1], [], []>} : vector<8x768xbf16>, vector<768x32xbf16>, vector<8x32xf32> -> vector<8x32xf32>
    %c0_4 = arith.constant 0 : index
    %c0_5 = arith.constant 0 : index
    %5 = vector.load %arg3[%c0_4, %c0_5] : memref<8x32xf32, #tpu.memory_space<vmem>>, vector<8x32xf32>
    %6 = arith.addf %4, %5 : vector<8x32xf32>
    %7 = tpu.iota {dimensions = array<i32: 1>} : vector<8x8xi32>
    %c5_i32 = arith.constant 5 : i32
    %8 = vector.broadcast %c5_i32 : i32 to vector<8x8xi32>
    %9 = arith.cmpi slt, %7, %8 : vector<8x8xi32>
    %c0_6 = arith.constant 0 : index
    %c0_7 = arith.constant 0 : index
    %c0_8 = arith.constant 0 : index
    %10 = vector.load %arg4[%c0_6, %c0_7, %c0_8] : memref<2x1x32xf32, #tpu.memory_space<vmem>>, vector<1x1x32xf32>
    %11 = vector.shape_cast %10 : vector<1x1x32xf32> to vector<1x32xf32>
    %c0_9 = arith.constant 0 : index
    %c0_10 = arith.constant 0 : index
    %c0_11 = arith.constant 0 : index
    %12 = vector.load %arg5[%c0_9, %c0_10, %c0_11] : memref<2x1x32xf32, #tpu.memory_space<vmem>>, vector<1x1x32xf32>
    %13 = vector.shape_cast %12 : vector<1x1x32xf32> to vector<1x32xf32>
    %cst_12 = arith.constant dense<0.000000e+00> : vector<8xf32>
    %14 = vector.multi_reduction <add>, %6, %cst_12 [1] : vector<8x32xf32> to vector<8xf32>
    %15 = vector.shape_cast %14 : vector<8xf32> to vector<8x1xf32>
    %cst_13 = arith.constant 3.200000e+01 : f32
    %16 = vector.broadcast %cst_13 : f32 to vector<8x1xf32>
    %17 = arith.divf %15, %16 : vector<8x1xf32>
    %18 = vector.broadcast %17 : vector<8x1xf32> to vector<8x32xf32>
    %19 = arith.subf %6, %18 : vector<8x32xf32>
    %20 = arith.mulf %19, %19 : vector<8x32xf32>
    %cst_14 = arith.constant dense<0.000000e+00> : vector<8xf32>
    %21 = vector.multi_reduction <add>, %20, %cst_14 [1] : vector<8x32xf32> to vector<8xf32>
    %22 = vector.shape_cast %21 : vector<8xf32> to vector<8x1xf32>
    %cst_15 = arith.constant 3.200000e+01 : f32
    %23 = vector.broadcast %cst_15 : f32 to vector<8x1xf32>
    %24 = arith.divf %22, %23 : vector<8x1xf32>
    %cst_16 = arith.constant 9.99999996E-13 : f32
    %25 = vector.broadcast %cst_16 : f32 to vector<8x1xf32>
    %26 = arith.addf %24, %25 : vector<8x1xf32>
    %27 = math.rsqrt %26 : vector<8x1xf32>
    %28 = vector.broadcast %27 : vector<8x1xf32> to vector<8x32xf32>
    %29 = arith.mulf %19, %28 : vector<8x32xf32>
    %30 = vector.broadcast %11 : vector<1x32xf32> to vector<8x32xf32>
    %31 = arith.mulf %29, %30 : vector<8x32xf32>
    %32 = vector.broadcast %13 : vector<1x32xf32> to vector<8x32xf32>
    %33 = arith.addf %31, %32 : vector<8x32xf32>
    %c0_17 = arith.constant 0 : index
    %c0_18 = arith.constant 0 : index
    %c0_19 = arith.constant 0 : index
    %34 = vector.load %arg6[%c0_17, %c0_18, %c0_19] : memref<2x32x96xbf16, #tpu.memory_space<vmem>>, vector<1x32x96xbf16>
    %35 = vector.shape_cast %34 : vector<1x32x96xbf16> to vector<32x96xbf16>
    %36 = arith.truncf %33 : vector<8x32xf32> to vector<8x32xbf16>
    %cst_20 = arith.constant dense<0.000000e+00> : vector<8x96xf32>
    %37 = tpu.matmul %36, %35, %cst_20 {dimension_numbers = #tpu.dot_dimension_numbers<[1], [0], [0], [1], [0, 0, 1, 1], [], []>} : vector<8x32xbf16>, vector<32x96xbf16>, vector<8x96xf32> -> vector<8x96xf32>
    %c0_21 = arith.constant 0 : index
    %c0_22 = arith.constant 0 : index
    %c0_23 = arith.constant 0 : index
    %38 = vector.load %arg7[%c0_21, %c0_22, %c0_23] : memref<2x1x96xf32, #tpu.memory_space<vmem>>, vector<1x1x96xf32>
    %39 = vector.shape_cast %38 : vector<1x1x96xf32> to vector<1x96xf32>
    %40 = vector.broadcast %39 : vector<1x96xf32> to vector<8x96xf32>
    %41 = arith.addf %37, %40 : vector<8x96xf32>
    %c0_24 = arith.constant 0 : index
    %c0_25 = arith.constant 0 : index
    %c0_26 = arith.constant 0 : index
    %42 = vector.load %arg8[%c0_24, %c0_25, %c0_26] : memref<2x32x32xbf16, #tpu.memory_space<vmem>>, vector<1x32x32xbf16>
    %43 = vector.shape_cast %42 : vector<1x32x32xbf16> to vector<32x32xbf16>
    %cst_27 = arith.constant 0.000000e+00 : f32
    %44 = vector.broadcast %cst_27 : f32 to vector<8x32xf32>
    %45 = vector.extract_strided_slice %41 {offsets = [0, 0], sizes = [8, 16], strides = [1, 1]} : vector<8x96xf32> to vector<8x16xf32>
    %46 = vector.extract_strided_slice %41 {offsets = [0, 32], sizes = [8, 16], strides = [1, 1]} : vector<8x96xf32> to vector<8x16xf32>
    %47 = vector.extract_strided_slice %41 {offsets = [0, 64], sizes = [8, 16], strides = [1, 1]} : vector<8x96xf32> to vector<8x16xf32>
    %48 = arith.truncf %45 : vector<8x16xf32> to vector<8x16xbf16>
    %49 = arith.truncf %46 : vector<8x16xf32> to vector<8x16xbf16>
    "tpu.trace_start"() <{level = 10 : i32, message = "qd,kd->qk"}> : () -> ()
    %cst_28 = arith.constant dense<0.000000e+00> : vector<8x8xf32>
    %50 = tpu.matmul %48, %49, %cst_28 {dimension_numbers = #tpu.dot_dimension_numbers<[1], [1], [0], [0], [0, 0, 1, 0], [], []>} : vector<8x16xbf16>, vector<8x16xbf16>, vector<8x8xf32> -> vector<8x8xf32>
    "tpu.trace_stop"() : () -> ()
    %cst_29 = arith.constant 2.500000e-01 : f32
    %51 = vector.broadcast %cst_29 : f32 to vector<8x8xf32>
    %52 = arith.mulf %50, %51 : vector<8x8xf32>
    %cst_30 = arith.constant -1.000000e+30 : f32
    %53 = vector.broadcast %cst_30 : f32 to vector<8x8xf32>
    %54 = arith.select %9, %52, %53 : vector<8x8xi1>, vector<8x8xf32>
    %cst_31 = arith.constant dense<0xFF800000> : vector<8xf32>
    %55 = vector.multi_reduction <maximumf>, %54, %cst_31 [1] : vector<8x8xf32> to vector<8xf32>
    %56 = vector.shape_cast %55 : vector<8xf32> to vector<8x1xf32>
    %57 = vector.broadcast %56 : vector<8x1xf32> to vector<8x8xf32>
    %58 = arith.subf %54, %57 : vector<8x8xf32>
    %59 = math.exp %58 : vector<8x8xf32>
    %cst_32 = arith.constant dense<0.000000e+00> : vector<8xf32>
    %60 = vector.multi_reduction <add>, %59, %cst_32 [1] : vector<8x8xf32> to vector<8xf32>
    %61 = vector.shape_cast %60 : vector<8xf32> to vector<8x1xf32>
    %62 = tpu.reciprocal %61 {approx = true} : vector<8x1xf32> -> vector<8x1xf32>
    %63 = vector.broadcast %62 : vector<8x1xf32> to vector<8x8xf32>
    %64 = arith.mulf %59, %63 : vector<8x8xf32>
    %65 = arith.truncf %64 : vector<8x8xf32> to vector<8x8xbf16>
    %66 = arith.truncf %47 : vector<8x16xf32> to vector<8x16xbf16>
    %cst_33 = arith.constant dense<0.000000e+00> : vector<8x16xf32>
    %67 = tpu.matmul %65, %66, %cst_33 {dimension_numbers = #tpu.dot_dimension_numbers<[1], [0], [0], [1], [0, 0, 1, 1], [], []>} : vector<8x8xbf16>, vector<8x16xbf16>, vector<8x16xf32> -> vector<8x16xf32>
    %68 = vector.extract_strided_slice %43 {offsets = [0, 0], sizes = [16, 32], strides = [1, 1]} : vector<32x32xbf16> to vector<16x32xbf16>
    %69 = arith.truncf %67 : vector<8x16xf32> to vector<8x16xbf16>
    %cst_34 = arith.constant dense<0.000000e+00> : vector<8x32xf32>
    %70 = tpu.matmul %69, %68, %cst_34 {dimension_numbers = #tpu.dot_dimension_numbers<[1], [0], [0], [1], [0, 0, 1, 1], [], []>} : vector<8x16xbf16>, vector<16x32xbf16>, vector<8x32xf32> -> vector<8x32xf32>
    %71 = arith.addf %44, %70 : vector<8x32xf32>
    %72 = vector.extract_strided_slice %41 {offsets = [0, 16], sizes = [8, 16], strides = [1, 1]} : vector<8x96xf32> to vector<8x16xf32>
    %73 = vector.extract_strided_slice %41 {offsets = [0, 48], sizes = [8, 16], strides = [1, 1]} : vector<8x96xf32> to vector<8x16xf32>
    %74 = vector.extract_strided_slice %41 {offsets = [0, 80], sizes = [8, 16], strides = [1, 1]} : vector<8x96xf32> to vector<8x16xf32>
    %75 = arith.truncf %72 : vector<8x16xf32> to vector<8x16xbf16>
    %76 = arith.truncf %73 : vector<8x16xf32> to vector<8x16xbf16>
    "tpu.trace_start"() <{level = 10 : i32, message = "qd,kd->qk"}> : () -> ()
    %cst_35 = arith.constant dense<0.000000e+00> : vector<8x8xf32>
    %77 = tpu.matmul %75, %76, %cst_35 {dimension_numbers = #tpu.dot_dimension_numbers<[1], [1], [0], [0], [0, 0, 1, 0], [], []>} : vector<8x16xbf16>, vector<8x16xbf16>, vector<8x8xf32> -> vector<8x8xf32>
    "tpu.trace_stop"() : () -> ()
    %cst_36 = arith.constant 2.500000e-01 : f32
    %78 = vector.broadcast %cst_36 : f32 to vector<8x8xf32>
    %79 = arith.mulf %77, %78 : vector<8x8xf32>
    %cst_37 = arith.constant -1.000000e+30 : f32
    %80 = vector.broadcast %cst_37 : f32 to vector<8x8xf32>
    %81 = arith.select %9, %79, %80 : vector<8x8xi1>, vector<8x8xf32>
    %cst_38 = arith.constant dense<0xFF800000> : vector<8xf32>
    %82 = vector.multi_reduction <maximumf>, %81, %cst_38 [1] : vector<8x8xf32> to vector<8xf32>
    %83 = vector.shape_cast %82 : vector<8xf32> to vector<8x1xf32>
    %84 = vector.broadcast %83 : vector<8x1xf32> to vector<8x8xf32>
    %85 = arith.subf %81, %84 : vector<8x8xf32>
    %86 = math.exp %85 : vector<8x8xf32>
    %cst_39 = arith.constant dense<0.000000e+00> : vector<8xf32>
    %87 = vector.multi_reduction <add>, %86, %cst_39 [1] : vector<8x8xf32> to vector<8xf32>
    %88 = vector.shape_cast %87 : vector<8xf32> to vector<8x1xf32>
    %89 = tpu.reciprocal %88 {approx = true} : vector<8x1xf32> -> vector<8x1xf32>
    %90 = vector.broadcast %89 : vector<8x1xf32> to vector<8x8xf32>
    %91 = arith.mulf %86, %90 : vector<8x8xf32>
    %92 = arith.truncf %91 : vector<8x8xf32> to vector<8x8xbf16>
    %93 = arith.truncf %74 : vector<8x16xf32> to vector<8x16xbf16>
    %cst_40 = arith.constant dense<0.000000e+00> : vector<8x16xf32>
    %94 = tpu.matmul %92, %93, %cst_40 {dimension_numbers = #tpu.dot_dimension_numbers<[1], [0], [0], [1], [0, 0, 1, 1], [], []>} : vector<8x8xbf16>, vector<8x16xbf16>, vector<8x16xf32> -> vector<8x16xf32>
    %95 = vector.extract_strided_slice %43 {offsets = [16, 0], sizes = [16, 32], strides = [1, 1]} : vector<32x32xbf16> to vector<16x32xbf16>
    %96 = arith.truncf %94 : vector<8x16xf32> to vector<8x16xbf16>
    %cst_41 = arith.constant dense<0.000000e+00> : vector<8x32xf32>
    %97 = tpu.matmul %96, %95, %cst_41 {dimension_numbers = #tpu.dot_dimension_numbers<[1], [0], [0], [1], [0, 0, 1, 1], [], []>} : vector<8x16xbf16>, vector<16x32xbf16>, vector<8x32xf32> -> vector<8x32xf32>
    %98 = arith.addf %71, %97 : vector<8x32xf32>
    %99 = arith.addf %6, %98 : vector<8x32xf32>
    %c0_42 = arith.constant 0 : index
    %c0_43 = arith.constant 0 : index
    %c0_44 = arith.constant 0 : index
    %100 = vector.load %arg9[%c0_42, %c0_43, %c0_44] : memref<2x1x32xf32, #tpu.memory_space<vmem>>, vector<1x1x32xf32>
    %101 = vector.shape_cast %100 : vector<1x1x32xf32> to vector<1x32xf32>
    %102 = vector.broadcast %101 : vector<1x32xf32> to vector<8x32xf32>
    %103 = arith.addf %99, %102 : vector<8x32xf32>
    %c0_45 = arith.constant 0 : index
    %c0_46 = arith.constant 0 : index
    %c0_47 = arith.constant 0 : index
    %104 = vector.load %arg10[%c0_45, %c0_46, %c0_47] : memref<2x1x32xf32, #tpu.memory_space<vmem>>, vector<1x1x32xf32>
    %105 = vector.shape_cast %104 : vector<1x1x32xf32> to vector<1x32xf32>
    %c0_48 = arith.constant 0 : index
    %c0_49 = arith.constant 0 : index
    %c0_50 = arith.constant 0 : index
    %106 = vector.load %arg11[%c0_48, %c0_49, %c0_50] : memref<2x1x32xf32, #tpu.memory_space<vmem>>, vector<1x1x32xf32>
    %107 = vector.shape_cast %106 : vector<1x1x32xf32> to vector<1x32xf32>
    %cst_51 = arith.constant dense<0.000000e+00> : vector<8xf32>
    %108 = vector.multi_reduction <add>, %103, %cst_51 [1] : vector<8x32xf32> to vector<8xf32>
    %109 = vector.shape_cast %108 : vector<8xf32> to vector<8x1xf32>
    %cst_52 = arith.constant 3.200000e+01 : f32
    %110 = vector.broadcast %cst_52 : f32 to vector<8x1xf32>
    %111 = arith.divf %109, %110 : vector<8x1xf32>
    %112 = vector.broadcast %111 : vector<8x1xf32> to vector<8x32xf32>
    %113 = arith.subf %103, %112 : vector<8x32xf32>
    %114 = arith.mulf %113, %113 : vector<8x32xf32>
    %cst_53 = arith.constant dense<0.000000e+00> : vector<8xf32>
    %115 = vector.multi_reduction <add>, %114, %cst_53 [1] : vector<8x32xf32> to vector<8xf32>
    %116 = vector.shape_cast %115 : vector<8xf32> to vector<8x1xf32>
    %cst_54 = arith.constant 3.200000e+01 : f32
    %117 = vector.broadcast %cst_54 : f32 to vector<8x1xf32>
    %118 = arith.divf %116, %117 : vector<8x1xf32>
    %cst_55 = arith.constant 9.99999996E-13 : f32
    %119 = vector.broadcast %cst_55 : f32 to vector<8x1xf32>
    %120 = arith.addf %118, %119 : vector<8x1xf32>
    %121 = math.rsqrt %120 : vector<8x1xf32>
    %122 = vector.broadcast %121 : vector<8x1xf32> to vector<8x32xf32>
    %123 = arith.mulf %113, %122 : vector<8x32xf32>
    %124 = vector.broadcast %105 : vector<1x32xf32> to vector<8x32xf32>
    %125 = arith.mulf %123, %124 : vector<8x32xf32>
    %126 = vector.broadcast %107 : vector<1x32xf32> to vector<8x32xf32>
    %127 = arith.addf %125, %126 : vector<8x32xf32>
    %c0_56 = arith.constant 0 : index
    %c0_57 = arith.constant 0 : index
    %c0_58 = arith.constant 0 : index
    %128 = vector.load %arg12[%c0_56, %c0_57, %c0_58] : memref<2x32x64xbf16, #tpu.memory_space<vmem>>, vector<1x32x64xbf16>
    %129 = vector.shape_cast %128 : vector<1x32x64xbf16> to vector<32x64xbf16>
    %130 = arith.truncf %127 : vector<8x32xf32> to vector<8x32xbf16>
    %cst_59 = arith.constant dense<0.000000e+00> : vector<8x64xf32>
    %131 = tpu.matmul %130, %129, %cst_59 {dimension_numbers = #tpu.dot_dimension_numbers<[1], [0], [0], [1], [0, 0, 1, 1], [], []>} : vector<8x32xbf16>, vector<32x64xbf16>, vector<8x64xf32> -> vector<8x64xf32>
    %c0_60 = arith.constant 0 : index
    %c0_61 = arith.constant 0 : index
    %c0_62 = arith.constant 0 : index
    %132 = vector.load %arg13[%c0_60, %c0_61, %c0_62] : memref<2x1x64xf32, #tpu.memory_space<vmem>>, vector<1x1x64xf32>
    %133 = vector.shape_cast %132 : vector<1x1x64xf32> to vector<1x64xf32>
    %134 = vector.broadcast %133 : vector<1x64xf32> to vector<8x64xf32>
    %135 = arith.addf %131, %134 : vector<8x64xf32>
    %136 = arith.mulf %135, %135 : vector<8x64xf32>
    %137 = arith.mulf %135, %136 : vector<8x64xf32>
    %cst_63 = arith.constant 4.471500e-02 : f32
    %138 = vector.broadcast %cst_63 : f32 to vector<8x64xf32>
    %139 = arith.mulf %138, %137 : vector<8x64xf32>
    %140 = arith.addf %135, %139 : vector<8x64xf32>
    %cst_64 = arith.constant 0.797884583 : f32
    %141 = vector.broadcast %cst_64 : f32 to vector<8x64xf32>
    %142 = arith.mulf %141, %140 : vector<8x64xf32>
    %143 = math.tanh %142 : vector<8x64xf32>
    %cst_65 = arith.constant 1.000000e+00 : f32
    %144 = vector.broadcast %cst_65 : f32 to vector<8x64xf32>
    %145 = arith.addf %144, %143 : vector<8x64xf32>
    %cst_66 = arith.constant 5.000000e-01 : f32
    %146 = vector.broadcast %cst_66 : f32 to vector<8x64xf32>
    %147 = arith.mulf %146, %145 : vector<8x64xf32>
    %148 = arith.mulf %135, %147 : vector<8x64xf32>
    %c0_67 = arith.constant 0 : index
    %c0_68 = arith.constant 0 : index
    %c0_69 = arith.constant 0 : index
    %149 = vector.load %arg14[%c0_67, %c0_68, %c0_69] : memref<2x64x32xbf16, #tpu.memory_space<vmem>>, vector<1x64x32xbf16>
    %150 = vector.shape_cast %149 : vector<1x64x32xbf16> to vector<64x32xbf16>
    %151 = arith.truncf %148 : vector<8x64xf32> to vector<8x64xbf16>
    %cst_70 = arith.constant dense<0.000000e+00> : vector<8x32xf32>
    %152 = tpu.matmul %151, %150, %cst_70 {dimension_numbers = #tpu.dot_dimension_numbers<[1], [0], [0], [1], [0, 0, 1, 1], [], []>} : vector<8x64xbf16>, vector<64x32xbf16>, vector<8x32xf32> -> vector<8x32xf32>
    %153 = arith.addf %103, %152 : vector<8x32xf32>
    %c0_71 = arith.constant 0 : index
    %c0_72 = arith.constant 0 : index
    %c0_73 = arith.constant 0 : index
    %154 = vector.load %arg15[%c0_71, %c0_72, %c0_73] : memref<2x1x32xf32, #tpu.memory_space<vmem>>, vector<1x1x32xf32>
    %155 = vector.shape_cast %154 : vector<1x1x32xf32> to vector<1x32xf32>
    %156 = vector.broadcast %155 : vector<1x32xf32> to vector<8x32xf32>
    %157 = arith.addf %153, %156 : vector<8x32xf32>
    %c1 = arith.constant 1 : index
    %c0_74 = arith.constant 0 : index
    %c0_75 = arith.constant 0 : index
    %158 = vector.load %arg4[%c1, %c0_74, %c0_75] : memref<2x1x32xf32, #tpu.memory_space<vmem>>, vector<1x1x32xf32>
    %159 = vector.shape_cast %158 : vector<1x1x32xf32> to vector<1x32xf32>
    %c1_76 = arith.constant 1 : index
    %c0_77 = arith.constant 0 : index
    %c0_78 = arith.constant 0 : index
    %160 = vector.load %arg5[%c1_76, %c0_77, %c0_78] : memref<2x1x32xf32, #tpu.memory_space<vmem>>, vector<1x1x32xf32>
    %161 = vector.shape_cast %160 : vector<1x1x32xf32> to vector<1x32xf32>
    %cst_79 = arith.constant dense<0.000000e+00> : vector<8xf32>
    %162 = vector.multi_reduction <add>, %157, %cst_79 [1] : vector<8x32xf32> to vector<8xf32>
    %163 = vector.shape_cast %162 : vector<8xf32> to vector<8x1xf32>
    %cst_80 = arith.constant 3.200000e+01 : f32
    %164 = vector.broadcast %cst_80 : f32 to vector<8x1xf32>
    %165 = arith.divf %163, %164 : vector<8x1xf32>
    %166 = vector.broadcast %165 : vector<8x1xf32> to vector<8x32xf32>
    %167 = arith.subf %157, %166 : vector<8x32xf32>
    %168 = arith.mulf %167, %167 : vector<8x32xf32>
    %cst_81 = arith.constant dense<0.000000e+00> : vector<8xf32>
    %169 = vector.multi_reduction <add>, %168, %cst_81 [1] : vector<8x32xf32> to vector<8xf32>
    %170 = vector.shape_cast %169 : vector<8xf32> to vector<8x1xf32>
    %cst_82 = arith.constant 3.200000e+01 : f32
    %171 = vector.broadcast %cst_82 : f32 to vector<8x1xf32>
    %172 = arith.divf %170, %171 : vector<8x1xf32>
    %cst_83 = arith.constant 9.99999996E-13 : f32
    %173 = vector.broadcast %cst_83 : f32 to vector<8x1xf32>
    %174 = arith.addf %172, %173 : vector<8x1xf32>
    %175 = math.rsqrt %174 : vector<8x1xf32>
    %176 = vector.broadcast %175 : vector<8x1xf32> to vector<8x32xf32>
    %177 = arith.mulf %167, %176 : vector<8x32xf32>
    %178 = vector.broadcast %159 : vector<1x32xf32> to vector<8x32xf32>
    %179 = arith.mulf %177, %178 : vector<8x32xf32>
    %180 = vector.broadcast %161 : vector<1x32xf32> to vector<8x32xf32>
    %181 = arith.addf %179, %180 : vector<8x32xf32>
    %c1_84 = arith.constant 1 : index
    %c0_85 = arith.constant 0 : index
    %c0_86 = arith.constant 0 : index
    %182 = vector.load %arg6[%c1_84, %c0_85, %c0_86] : memref<2x32x96xbf16, #tpu.memory_space<vmem>>, vector<1x32x96xbf16>
    %183 = vector.shape_cast %182 : vector<1x32x96xbf16> to vector<32x96xbf16>
    %184 = arith.truncf %181 : vector<8x32xf32> to vector<8x32xbf16>
    %cst_87 = arith.constant dense<0.000000e+00> : vector<8x96xf32>
    %185 = tpu.matmul %184, %183, %cst_87 {dimension_numbers = #tpu.dot_dimension_numbers<[1], [0], [0], [1], [0, 0, 1, 1], [], []>} : vector<8x32xbf16>, vector<32x96xbf16>, vector<8x96xf32> -> vector<8x96xf32>
    %c1_88 = arith.constant 1 : index
    %c0_89 = arith.constant 0 : index
    %c0_90 = arith.constant 0 : index
    %186 = vector.load %arg7[%c1_88, %c0_89, %c0_90] : memref<2x1x96xf32, #tpu.memory_space<vmem>>, vector<1x1x96xf32>
    %187 = vector.shape_cast %186 : vector<1x1x96xf32> to vector<1x96xf32>
    %188 = vector.broadcast %187 : vector<1x96xf32> to vector<8x96xf32>
    %189 = arith.addf %185, %188 : vector<8x96xf32>
    %c1_91 = arith.constant 1 : index
    %c0_92 = arith.constant 0 : index
    %c0_93 = arith.constant 0 : index
    %190 = vector.load %arg8[%c1_91, %c0_92, %c0_93] : memref<2x32x32xbf16, #tpu.memory_space<vmem>>, vector<1x32x32xbf16>
    %191 = vector.shape_cast %190 : vector<1x32x32xbf16> to vector<32x32xbf16>
    %cst_94 = arith.constant 0.000000e+00 : f32
    %192 = vector.broadcast %cst_94 : f32 to vector<8x32xf32>
    %193 = vector.extract_strided_slice %189 {offsets = [0, 0], sizes = [8, 16], strides = [1, 1]} : vector<8x96xf32> to vector<8x16xf32>
    %194 = vector.extract_strided_slice %189 {offsets = [0, 32], sizes = [8, 16], strides = [1, 1]} : vector<8x96xf32> to vector<8x16xf32>
    %195 = vector.extract_strided_slice %189 {offsets = [0, 64], sizes = [8, 16], strides = [1, 1]} : vector<8x96xf32> to vector<8x16xf32>
    %196 = arith.truncf %193 : vector<8x16xf32> to vector<8x16xbf16>
    %197 = arith.truncf %194 : vector<8x16xf32> to vector<8x16xbf16>
    "tpu.trace_start"() <{level = 10 : i32, message = "qd,kd->qk"}> : () -> ()
    %cst_95 = arith.constant dense<0.000000e+00> : vector<8x8xf32>
    %198 = tpu.matmul %196, %197, %cst_95 {dimension_numbers = #tpu.dot_dimension_numbers<[1], [1], [0], [0], [0, 0, 1, 0], [], []>} : vector<8x16xbf16>, vector<8x16xbf16>, vector<8x8xf32> -> vector<8x8xf32>
    "tpu.trace_stop"() : () -> ()
    %cst_96 = arith.constant 2.500000e-01 : f32
    %199 = vector.broadcast %cst_96 : f32 to vector<8x8xf32>
    %200 = arith.mulf %198, %199 : vector<8x8xf32>
    %cst_97 = arith.constant -1.000000e+30 : f32
    %201 = vector.broadcast %cst_97 : f32 to vector<8x8xf32>
    %202 = arith.select %9, %200, %201 : vector<8x8xi1>, vector<8x8xf32>
    %cst_98 = arith.constant dense<0xFF800000> : vector<8xf32>
    %203 = vector.multi_reduction <maximumf>, %202, %cst_98 [1] : vector<8x8xf32> to vector<8xf32>
    %204 = vector.shape_cast %203 : vector<8xf32> to vector<8x1xf32>
    %205 = vector.broadcast %204 : vector<8x1xf32> to vector<8x8xf32>
    %206 = arith.subf %202, %205 : vector<8x8xf32>
    %207 = math.exp %206 : vector<8x8xf32>
    %cst_99 = arith.constant dense<0.000000e+00> : vector<8xf32>
    %208 = vector.multi_reduction <add>, %207, %cst_99 [1] : vector<8x8xf32> to vector<8xf32>
    %209 = vector.shape_cast %208 : vector<8xf32> to vector<8x1xf32>
    %210 = tpu.reciprocal %209 {approx = true} : vector<8x1xf32> -> vector<8x1xf32>
    %211 = vector.broadcast %210 : vector<8x1xf32> to vector<8x8xf32>
    %212 = arith.mulf %207, %211 : vector<8x8xf32>
    %213 = arith.truncf %212 : vector<8x8xf32> to vector<8x8xbf16>
    %214 = arith.truncf %195 : vector<8x16xf32> to vector<8x16xbf16>
    %cst_100 = arith.constant dense<0.000000e+00> : vector<8x16xf32>
    %215 = tpu.matmul %213, %214, %cst_100 {dimension_numbers = #tpu.dot_dimension_numbers<[1], [0], [0], [1], [0, 0, 1, 1], [], []>} : vector<8x8xbf16>, vector<8x16xbf16>, vector<8x16xf32> -> vector<8x16xf32>
    %216 = vector.extract_strided_slice %191 {offsets = [0, 0], sizes = [16, 32], strides = [1, 1]} : vector<32x32xbf16> to vector<16x32xbf16>
    %217 = arith.truncf %215 : vector<8x16xf32> to vector<8x16xbf16>
    %cst_101 = arith.constant dense<0.000000e+00> : vector<8x32xf32>
    %218 = tpu.matmul %217, %216, %cst_101 {dimension_numbers = #tpu.dot_dimension_numbers<[1], [0], [0], [1], [0, 0, 1, 1], [], []>} : vector<8x16xbf16>, vector<16x32xbf16>, vector<8x32xf32> -> vector<8x32xf32>
    %219 = arith.addf %192, %218 : vector<8x32xf32>
    %220 = vector.extract_strided_slice %189 {offsets = [0, 16], sizes = [8, 16], strides = [1, 1]} : vector<8x96xf32> to vector<8x16xf32>
    %221 = vector.extract_strided_slice %189 {offsets = [0, 48], sizes = [8, 16], strides = [1, 1]} : vector<8x96xf32> to vector<8x16xf32>
    %222 = vector.extract_strided_slice %189 {offsets = [0, 80], sizes = [8, 16], strides = [1, 1]} : vector<8x96xf32> to vector<8x16xf32>
    %223 = arith.truncf %220 : vector<8x16xf32> to vector<8x16xbf16>
    %224 = arith.truncf %221 : vector<8x16xf32> to vector<8x16xbf16>
    "tpu.trace_start"() <{level = 10 : i32, message = "qd,kd->qk"}> : () -> ()
    %cst_102 = arith.constant dense<0.000000e+00> : vector<8x8xf32>
    %225 = tpu.matmul %223, %224, %cst_102 {dimension_numbers = #tpu.dot_dimension_numbers<[1], [1], [0], [0], [0, 0, 1, 0], [], []>} : vector<8x16xbf16>, vector<8x16xbf16>, vector<8x8xf32> -> vector<8x8xf32>
    "tpu.trace_stop"() : () -> ()
    %cst_103 = arith.constant 2.500000e-01 : f32
    %226 = vector.broadcast %cst_103 : f32 to vector<8x8xf32>
    %227 = arith.mulf %225, %226 : vector<8x8xf32>
    %cst_104 = arith.constant -1.000000e+30 : f32
    %228 = vector.broadcast %cst_104 : f32 to vector<8x8xf32>
    %229 = arith.select %9, %227, %228 : vector<8x8xi1>, vector<8x8xf32>
    %cst_105 = arith.constant dense<0xFF800000> : vector<8xf32>
    %230 = vector.multi_reduction <maximumf>, %229, %cst_105 [1] : vector<8x8xf32> to vector<8xf32>
    %231 = vector.shape_cast %230 : vector<8xf32> to vector<8x1xf32>
    %232 = vector.broadcast %231 : vector<8x1xf32> to vector<8x8xf32>
    %233 = arith.subf %229, %232 : vector<8x8xf32>
    %234 = math.exp %233 : vector<8x8xf32>
    %cst_106 = arith.constant dense<0.000000e+00> : vector<8xf32>
    %235 = vector.multi_reduction <add>, %234, %cst_106 [1] : vector<8x8xf32> to vector<8xf32>
    %236 = vector.shape_cast %235 : vector<8xf32> to vector<8x1xf32>
    %237 = tpu.reciprocal %236 {approx = true} : vector<8x1xf32> -> vector<8x1xf32>
    %238 = vector.broadcast %237 : vector<8x1xf32> to vector<8x8xf32>
    %239 = arith.mulf %234, %238 : vector<8x8xf32>
    %240 = arith.truncf %239 : vector<8x8xf32> to vector<8x8xbf16>
    %241 = arith.truncf %222 : vector<8x16xf32> to vector<8x16xbf16>
    %cst_107 = arith.constant dense<0.000000e+00> : vector<8x16xf32>
    %242 = tpu.matmul %240, %241, %cst_107 {dimension_numbers = #tpu.dot_dimension_numbers<[1], [0], [0], [1], [0, 0, 1, 1], [], []>} : vector<8x8xbf16>, vector<8x16xbf16>, vector<8x16xf32> -> vector<8x16xf32>
    %243 = vector.extract_strided_slice %191 {offsets = [16, 0], sizes = [16, 32], strides = [1, 1]} : vector<32x32xbf16> to vector<16x32xbf16>
    %244 = arith.truncf %242 : vector<8x16xf32> to vector<8x16xbf16>
    %cst_108 = arith.constant dense<0.000000e+00> : vector<8x32xf32>
    %245 = tpu.matmul %244, %243, %cst_108 {dimension_numbers = #tpu.dot_dimension_numbers<[1], [0], [0], [1], [0, 0, 1, 1], [], []>} : vector<8x16xbf16>, vector<16x32xbf16>, vector<8x32xf32> -> vector<8x32xf32>
    %246 = arith.addf %219, %245 : vector<8x32xf32>
    %247 = arith.addf %157, %246 : vector<8x32xf32>
    %c1_109 = arith.constant 1 : index
    %c0_110 = arith.constant 0 : index
    %c0_111 = arith.constant 0 : index
    %248 = vector.load %arg9[%c1_109, %c0_110, %c0_111] : memref<2x1x32xf32, #tpu.memory_space<vmem>>, vector<1x1x32xf32>
    %249 = vector.shape_cast %248 : vector<1x1x32xf32> to vector<1x32xf32>
    %250 = vector.broadcast %249 : vector<1x32xf32> to vector<8x32xf32>
    %251 = arith.addf %247, %250 : vector<8x32xf32>
    %c1_112 = arith.constant 1 : index
    %c0_113 = arith.constant 0 : index
    %c0_114 = arith.constant 0 : index
    %252 = vector.load %arg10[%c1_112, %c0_113, %c0_114] : memref<2x1x32xf32, #tpu.memory_space<vmem>>, vector<1x1x32xf32>
    %253 = vector.shape_cast %252 : vector<1x1x32xf32> to vector<1x32xf32>
    %c1_115 = arith.constant 1 : index
    %c0_116 = arith.constant 0 : index
    %c0_117 = arith.constant 0 : index
    %254 = vector.load %arg11[%c1_115, %c0_116, %c0_117] : memref<2x1x32xf32, #tpu.memory_space<vmem>>, vector<1x1x32xf32>
    %255 = vector.shape_cast %254 : vector<1x1x32xf32> to vector<1x32xf32>
    %cst_118 = arith.constant dense<0.000000e+00> : vector<8xf32>
    %256 = vector.multi_reduction <add>, %251, %cst_118 [1] : vector<8x32xf32> to vector<8xf32>
    %257 = vector.shape_cast %256 : vector<8xf32> to vector<8x1xf32>
    %cst_119 = arith.constant 3.200000e+01 : f32
    %258 = vector.broadcast %cst_119 : f32 to vector<8x1xf32>
    %259 = arith.divf %257, %258 : vector<8x1xf32>
    %260 = vector.broadcast %259 : vector<8x1xf32> to vector<8x32xf32>
    %261 = arith.subf %251, %260 : vector<8x32xf32>
    %262 = arith.mulf %261, %261 : vector<8x32xf32>
    %cst_120 = arith.constant dense<0.000000e+00> : vector<8xf32>
    %263 = vector.multi_reduction <add>, %262, %cst_120 [1] : vector<8x32xf32> to vector<8xf32>
    %264 = vector.shape_cast %263 : vector<8xf32> to vector<8x1xf32>
    %cst_121 = arith.constant 3.200000e+01 : f32
    %265 = vector.broadcast %cst_121 : f32 to vector<8x1xf32>
    %266 = arith.divf %264, %265 : vector<8x1xf32>
    %cst_122 = arith.constant 9.99999996E-13 : f32
    %267 = vector.broadcast %cst_122 : f32 to vector<8x1xf32>
    %268 = arith.addf %266, %267 : vector<8x1xf32>
    %269 = math.rsqrt %268 : vector<8x1xf32>
    %270 = vector.broadcast %269 : vector<8x1xf32> to vector<8x32xf32>
    %271 = arith.mulf %261, %270 : vector<8x32xf32>
    %272 = vector.broadcast %253 : vector<1x32xf32> to vector<8x32xf32>
    %273 = arith.mulf %271, %272 : vector<8x32xf32>
    %274 = vector.broadcast %255 : vector<1x32xf32> to vector<8x32xf32>
    %275 = arith.addf %273, %274 : vector<8x32xf32>
    %c1_123 = arith.constant 1 : index
    %c0_124 = arith.constant 0 : index
    %c0_125 = arith.constant 0 : index
    %276 = vector.load %arg12[%c1_123, %c0_124, %c0_125] : memref<2x32x64xbf16, #tpu.memory_space<vmem>>, vector<1x32x64xbf16>
    %277 = vector.shape_cast %276 : vector<1x32x64xbf16> to vector<32x64xbf16>
    %278 = arith.truncf %275 : vector<8x32xf32> to vector<8x32xbf16>
    %cst_126 = arith.constant dense<0.000000e+00> : vector<8x64xf32>
    %279 = tpu.matmul %278, %277, %cst_126 {dimension_numbers = #tpu.dot_dimension_numbers<[1], [0], [0], [1], [0, 0, 1, 1], [], []>} : vector<8x32xbf16>, vector<32x64xbf16>, vector<8x64xf32> -> vector<8x64xf32>
    %c1_127 = arith.constant 1 : index
    %c0_128 = arith.constant 0 : index
    %c0_129 = arith.constant 0 : index
    %280 = vector.load %arg13[%c1_127, %c0_128, %c0_129] : memref<2x1x64xf32, #tpu.memory_space<vmem>>, vector<1x1x64xf32>
    %281 = vector.shape_cast %280 : vector<1x1x64xf32> to vector<1x64xf32>
    %282 = vector.broadcast %281 : vector<1x64xf32> to vector<8x64xf32>
    %283 = arith.addf %279, %282 : vector<8x64xf32>
    %284 = arith.mulf %283, %283 : vector<8x64xf32>
    %285 = arith.mulf %283, %284 : vector<8x64xf32>
    %cst_130 = arith.constant 4.471500e-02 : f32
    %286 = vector.broadcast %cst_130 : f32 to vector<8x64xf32>
    %287 = arith.mulf %286, %285 : vector<8x64xf32>
    %288 = arith.addf %283, %287 : vector<8x64xf32>
    %cst_131 = arith.constant 0.797884583 : f32
    %289 = vector.broadcast %cst_131 : f32 to vector<8x64xf32>
    %290 = arith.mulf %289, %288 : vector<8x64xf32>
    %291 = math.tanh %290 : vector<8x64xf32>
    %cst_132 = arith.constant 1.000000e+00 : f32
    %292 = vector.broadcast %cst_132 : f32 to vector<8x64xf32>
    %293 = arith.addf %292, %291 : vector<8x64xf32>
    %cst_133 = arith.constant 5.000000e-01 : f32
    %294 = vector.broadcast %cst_133 : f32 to vector<8x64xf32>
    %295 = arith.mulf %294, %293 : vector<8x64xf32>
    %296 = arith.mulf %283, %295 : vector<8x64xf32>
    %c1_134 = arith.constant 1 : index
    %c0_135 = arith.constant 0 : index
    %c0_136 = arith.constant 0 : index
    %297 = vector.load %arg14[%c1_134, %c0_135, %c0_136] : memref<2x64x32xbf16, #tpu.memory_space<vmem>>, vector<1x64x32xbf16>
    %298 = vector.shape_cast %297 : vector<1x64x32xbf16> to vector<64x32xbf16>
    %299 = arith.truncf %296 : vector<8x64xf32> to vector<8x64xbf16>
    %cst_137 = arith.constant dense<0.000000e+00> : vector<8x32xf32>
    %300 = tpu.matmul %299, %298, %cst_137 {dimension_numbers = #tpu.dot_dimension_numbers<[1], [0], [0], [1], [0, 0, 1, 1], [], []>} : vector<8x64xbf16>, vector<64x32xbf16>, vector<8x32xf32> -> vector<8x32xf32>
    %301 = arith.addf %251, %300 : vector<8x32xf32>
    %c1_138 = arith.constant 1 : index
    %c0_139 = arith.constant 0 : index
    %c0_140 = arith.constant 0 : index
    %302 = vector.load %arg15[%c1_138, %c0_139, %c0_140] : memref<2x1x32xf32, #tpu.memory_space<vmem>>, vector<1x1x32xf32>
    %303 = vector.shape_cast %302 : vector<1x1x32xf32> to vector<1x32xf32>
    %304 = vector.broadcast %303 : vector<1x32xf32> to vector<8x32xf32>
    %305 = arith.addf %301, %304 : vector<8x32xf32>
    %306 = vector.extract_strided_slice %305 {offsets = [0, 0], sizes = [1, 32], strides = [1, 1]} : vector<8x32xf32> to vector<1x32xf32>
    %c0_141 = arith.constant 0 : index
    %c0_142 = arith.constant 0 : index
    %307 = vector.load %arg16[%c0_141, %c0_142] : memref<1x32xf32, #tpu.memory_space<vmem>>, vector<1x32xf32>
    %c0_143 = arith.constant 0 : index
    %c0_144 = arith.constant 0 : index
    %308 = vector.load %arg17[%c0_143, %c0_144] : memref<1x32xf32, #tpu.memory_space<vmem>>, vector<1x32xf32>
    %cst_145 = arith.constant dense<0.000000e+00> : vector<1xf32>
    %309 = vector.multi_reduction <add>, %306, %cst_145 [1] : vector<1x32xf32> to vector<1xf32>
    %310 = vector.shape_cast %309 : vector<1xf32> to vector<1x1xf32>
    %cst_146 = arith.constant 3.200000e+01 : f32
    %311 = vector.broadcast %cst_146 : f32 to vector<1x1xf32>
    %312 = arith.divf %310, %311 : vector<1x1xf32>
    %313 = vector.broadcast %312 : vector<1x1xf32> to vector<1x32xf32>
    %314 = arith.subf %306, %313 : vector<1x32xf32>
    %315 = arith.mulf %314, %314 : vector<1x32xf32>
    %cst_147 = arith.constant dense<0.000000e+00> : vector<1xf32>
    %316 = vector.multi_reduction <add>, %315, %cst_147 [1] : vector<1x32xf32> to vector<1xf32>
    %317 = vector.shape_cast %316 : vector<1xf32> to vector<1x1xf32>
    %cst_148 = arith.constant 3.200000e+01 : f32
    %318 = vector.broadcast %cst_148 : f32 to vector<1x1xf32>
    %319 = arith.divf %317, %318 : vector<1x1xf32>
    %cst_149 = arith.constant 9.99999996E-13 : f32
    %320 = vector.broadcast %cst_149 : f32 to vector<1x1xf32>
    %321 = arith.addf %319, %320 : vector<1x1xf32>
    %322 = math.rsqrt %321 : vector<1x1xf32>
    %323 = vector.broadcast %322 : vector<1x1xf32> to vector<1x32xf32>
    %324 = arith.mulf %314, %323 : vector<1x32xf32>
    %325 = arith.mulf %324, %307 : vector<1x32xf32>
    %326 = arith.addf %325, %308 : vector<1x32xf32>
    %c0_150 = arith.constant 0 : index
    %c0_151 = arith.constant 0 : index
    %327 = vector.load %arg18[%c0_150, %c0_151] : memref<32x10xbf16, #tpu.memory_space<vmem>>, vector<32x10xbf16>
    %328 = arith.truncf %326 : vector<1x32xf32> to vector<1x32xbf16>
    %cst_152 = arith.constant dense<0.000000e+00> : vector<1x10xf32>
    %329 = tpu.matmul %328, %327, %cst_152 {dimension_numbers = #tpu.dot_dimension_numbers<[1], [0], [0], [1], [0, 0, 1, 1], [], []>} : vector<1x32xbf16>, vector<32x10xbf16>, vector<1x10xf32> -> vector<1x10xf32>
    %c0_153 = arith.constant 0 : index
    %c0_154 = arith.constant 0 : index
    %330 = vector.load %arg19[%c0_153, %c0_154] : memref<1x10xf32, #tpu.memory_space<vmem>>, vector<1x10xf32>
    %331 = arith.addf %329, %330 : vector<1x10xf32>
    %332 = arith.negf %331 : vector<1x10xf32>
    %333 = math.exp %332 : vector<1x10xf32>
    %cst_155 = arith.constant 1.000000e+00 : f32
    %334 = vector.broadcast %cst_155 : f32 to vector<1x10xf32>
    %335 = arith.addf %334, %333 : vector<1x10xf32>
    %336 = arith.divf %334, %335 : vector<1x10xf32>
    %c0_156 = arith.constant 0 : index
    %c0_157 = arith.constant 0 : index
    %c0_158 = arith.constant 0 : index
    %337 = vector.load %arg20[%c0_156, %c0_157, %c0_158] : memref<1x1x10xf32, #tpu.memory_space<vmem>>, vector<1x1x10xf32>
    %338 = vector.shape_cast %337 : vector<1x1x10xf32> to vector<1x10xf32>
    %339 = vector.shape_cast %336 : vector<1x10xf32> to vector<1x1x10xf32>
    tpu.vector_store %arg20[%c0_156, %c0_157, %c0_158], %339 {strides = array<i32>} : memref<1x1x10xf32, #tpu.memory_space<vmem>>, vector<1x1x10xf32>,
    return
  }
  func.func @transform_0(%arg0: i32) -> (i32, i32, i32) {
    %c0_i32 = arith.constant 0 : i32
    %c0_i32_0 = arith.constant 0 : i32
    %c0_i32_1 = arith.constant 0 : i32
    return %arg0, %c0_i32, %c0_i32_0 : i32, i32, i32
  }
  func.func @transform_1(%arg0: i32) -> (i32, i32) {
    %c0_i32 = arith.constant 0 : i32
    %c0_i32_0 = arith.constant 0 : i32
    %c0_i32_1 = arith.constant 0 : i32
    return %c0_i32, %c0_i32_0 : i32, i32
  }
  func.func @transform_2(%arg0: i32) -> (i32, i32) {
    %c0_i32 = arith.constant 0 : i32
    %c0_i32_0 = arith.constant 0 : i32
    %c0_i32_1 = arith.constant 0 : i32
    return %c0_i32, %c0_i32_0 : i32, i32
  }
  func.func @transform_3(%arg0: i32) -> (i32, i32, i32) {
    %c0_i32 = arith.constant 0 : i32
    %c0_i32_0 = arith.constant 0 : i32
    %c0_i32_1 = arith.constant 0 : i32
    %c0_i32_2 = arith.constant 0 : i32
    return %c0_i32, %c0_i32_0, %c0_i32_1 : i32, i32, i32
  }
  func.func @transform_4(%arg0: i32) -> (i32, i32, i32) {
    %c0_i32 = arith.constant 0 : i32
    %c0_i32_0 = arith.constant 0 : i32
    %c0_i32_1 = arith.constant 0 : i32
    %c0_i32_2 = arith.constant 0 : i32
    return %c0_i32, %c0_i32_0, %c0_i32_1 : i32, i32, i32
  }
  func.func @transform_5(%arg0: i32) -> (i32, i32, i32) {
    %c0_i32 = arith.constant 0 : i32
    %c0_i32_0 = arith.constant 0 : i32
    %c0_i32_1 = arith.constant 0 : i32
    %c0_i32_2 = arith.constant 0 : i32
    return %c0_i32, %c0_i32_0, %c0_i32_1 : i32, i32, i32
  }
  func.func @transform_6(%arg0: i32) -> (i32, i32, i32) {
    %c0_i32 = arith.constant 0 : i32
    %c0_i32_0 = arith.constant 0 : i32
    %c0_i32_1 = arith.constant 0 : i32
    %c0_i32_2 = arith.constant 0 : i32
    return %c0_i32, %c0_i32_0, %c0_i32_1 : i32, i32, i32
  }
  func.func @transform_7(%arg0: i32) -> (i32, i32, i32) {
    %c0_i32 = arith.constant 0 : i32
    %c0_i32_0 = arith.constant 0 : i32
    %c0_i32_1 = arith.constant 0 : i32
    %c0_i32_2 = arith.constant 0 : i32
    return %c0_i32, %c0_i32_0, %c0_i32_1 : i32, i32, i32
  }
  func.func @transform_8(%arg0: i32) -> (i32, i32, i32) {
    %c0_i32 = arith.constant 0 : i32
    %c0_i32_0 = arith.constant 0 : i32
    %c0_i32_1 = arith.constant 0 : i32
    %c0_i32_2 = arith.constant 0 : i32
    return %c0_i32, %c0_i32_0, %c0_i32_1 : i32, i32, i32
  }
  func.func @transform_9(%arg0: i32) -> (i32, i32, i32) {
    %c0_i32 = arith.constant 0 : i32
    %c0_i32_0 = arith.constant 0 : i32
    %c0_i32_1 = arith.constant 0 : i32
    %c0_i32_2 = arith.constant 0 : i32
    return %c0_i32, %c0_i32_0, %c0_i32_1 : i32, i32, i32
  }
  func.func @transform_10(%arg0: i32) -> (i32, i32, i32) {
    %c0_i32 = arith.constant 0 : i32
    %c0_i32_0 = arith.constant 0 : i32
    %c0_i32_1 = arith.constant 0 : i32
    %c0_i32_2 = arith.constant 0 : i32
    return %c0_i32, %c0_i32_0, %c0_i32_1 : i32, i32, i32
  }
  func.func @transform_11(%arg0: i32) -> (i32, i32, i32) {
    %c0_i32 = arith.constant 0 : i32
    %c0_i32_0 = arith.constant 0 : i32
    %c0_i32_1 = arith.constant 0 : i32
    %c0_i32_2 = arith.constant 0 : i32
    return %c0_i32, %c0_i32_0, %c0_i32_1 : i32, i32, i32
  }
  func.func @transform_12(%arg0: i32) -> (i32, i32, i32) {
    %c0_i32 = arith.constant 0 : i32
    %c0_i32_0 = arith.constant 0 : i32
    %c0_i32_1 = arith.constant 0 : i32
    %c0_i32_2 = arith.constant 0 : i32
    return %c0_i32, %c0_i32_0, %c0_i32_1 : i32, i32, i32
  }
  func.func @transform_13(%arg0: i32) -> (i32, i32, i32) {
    %c0_i32 = arith.constant 0 : i32
    %c0_i32_0 = arith.constant 0 : i32
    %c0_i32_1 = arith.constant 0 : i32
    %c0_i32_2 = arith.constant 0 : i32
    return %c0_i32, %c0_i32_0, %c0_i32_1 : i32, i32, i32
  }
  func.func @transform_14(%arg0: i32) -> (i32, i32, i32) {
    %c0_i32 = arith.constant 0 : i32
    %c0_i32_0 = arith.constant 0 : i32
    %c0_i32_1 = arith.constant 0 : i32
    %c0_i32_2 = arith.constant 0 : i32
    return %c0_i32, %c0_i32_0, %c0_i32_1 : i32, i32, i32
  }
  func.func @transform_15(%arg0: i32) -> (i32, i32) {
    %c0_i32 = arith.constant 0 : i32
    %c0_i32_0 = arith.constant 0 : i32
    %c0_i32_1 = arith.constant 0 : i32
    return %c0_i32, %c0_i32_0 : i32, i32
  }
  func.func @transform_16(%arg0: i32) -> (i32, i32) {
    %c0_i32 = arith.constant 0 : i32
    %c0_i32_0 = arith.constant 0 : i32
    %c0_i32_1 = arith.constant 0 : i32
    return %c0_i32, %c0_i32_0 : i32, i32
  }
  func.func @transform_17(%arg0: i32) -> (i32, i32) {
    %c0_i32 = arith.constant 0 : i32
    %c0_i32_0 = arith.constant 0 : i32
    %c0_i32_1 = arith.constant 0 : i32
    return %c0_i32, %c0_i32_0 : i32, i32
  }
  func.func @transform_18(%arg0: i32) -> (i32, i32) {
    %c0_i32 = arith.constant 0 : i32
    %c0_i32_0 = arith.constant 0 : i32
    %c0_i32_1 = arith.constant 0 : i32
    return %c0_i32, %c0_i32_0 : i32, i32
  }
  func.func @transform_19(%arg0: i32) -> (i32, i32, i32) {
    %c0_i32 = arith.constant 0 : i32
    %c0_i32_0 = arith.constant 0 : i32
    %c0_i32_1 = arith.constant 0 : i32
    return %arg0, %c0_i32, %c0_i32_0 : i32, i32, i32
  }
}

</mosaic_0001>

<bundles_post_ra>
// kernel: finetuned_vit_forward.1
= control target key start
LH: loop header
LB: loop body
LE: loop exit
PB: predicated region body
PF: predicated region fallthrough
CT: control target
= control target key end

     0   :  { %s3784_s0 = inlined_call_operand.vmem [shape: f32[2,8,768], index: 0, kind: input, shape index: {}]   ;;  %s3785_s1 = inlined_call_operand.vmem [shape: bf16[768,32], index: 1, kind: input, shape index: {}]   ;;  %s3786_s2 = inlined_call_operand.vmem [shape: f32[8,32], index: 2, kind: input, shape index: {}]   ;;  %s3787_s3 = inlined_call_operand.vmem [shape: f32[2,1,32], index: 3, kind: input, shape index: {}]   ;;  %s3788_s4 = inlined_call_operand.vmem [shape: f32[2,1,32], index: 4, kind: input, shape index: {}]   ;;  %s3789_s5 = inlined_call_operand.vmem [shape: bf16[2,32,96], index: 5, kind: input, shape index: {}]   ;;  %s3790_s6 = inlined_call_operand.vmem [shape: f32[2,1,96], index: 6, kind: input, shape index: {}]   ;;  %s3791_s7 = inlined_call_operand.vmem [shape: bf16[2,32,32], index: 7, kind: input, shape index: {}]   ;;  %s3792_s8 = inlined_call_operand.vmem [shape: f32[2,1,32], index: 8, kind: input, shape index: {}]   ;;  %s3793_s9 = inlined_call_operand.vmem [shape: f32[2,1,32], index: 9, kind: input, shape index: {}]   ;;  %s3794_s10 = inlined_call_operand.vmem [shape: f32[2,1,32], index: 10, kind: input, shape index: {}]   ;;  %s3795_s11 = inlined_call_operand.vmem [shape: bf16[2,32,64], index: 11, kind: input, shape index: {}]   ;;  %s3796_s12 = inlined_call_operand.vmem [shape: f32[2,1,64], index: 12, kind: input, shape index: {}]   ;;  %s3797_s13 = inlined_call_operand.vmem [shape: bf16[2,64,32], index: 13, kind: input, shape index: {}]   ;;  %s3798_s14 = inlined_call_operand.vmem [shape: f32[2,1,32], index: 14, kind: input, shape index: {}]   ;;  %s3799_s15 = inlined_call_operand.vmem [shape: f32[1,32], index: 15, kind: input, shape index: {}]   ;;  %s3800_s16 = inlined_call_operand.vmem [shape: f32[1,32], index: 16, kind: input, shape index: {}]   ;;  %s3801_s17 = inlined_call_operand.vmem [shape: bf16[32,10], index: 17, kind: input, shape index: {}]   ;;  %s3802_s18 = inlined_call_operand.vmem [shape: f32[1,10], index: 18, kind: input, shape index: {}]   ;;  %s3803_s19 = inlined_call_operand.hbm [shape: f32[2,1,10], index: 19, kind: output, shape index: {}]  }
   0x1   :  { %3814 = sst [smem:[#allocation11_spill]] %s3784_s0 }
   0x2   :  { %3815 = sst [smem:[#allocation12_spill]] %s3785_s1 }
   0x3   :  { %3816 = sst [smem:[#allocation13_spill]] %s3786_s2 }
   0x4   :  { %3817 = sst [smem:[#allocation14_spill]] %s3787_s3 }
   0x5   :  { %3818 = sst [smem:[#allocation15_spill]] %s3788_s4 }
   0x6   :  { %3819 = sst [smem:[#allocation16_spill]] %s3789_s5 }
   0x7   :  { %3820 = sst [smem:[#allocation17_spill]] %s3803_s19 }
   0x8   :  { %24 = vsyncpa [#allocation3], 0 }
   0x9   :  { %26 = vsyncpa [#allocation3 + $0x1], 0  ;;  %s3256_s0 = smov 0   ;;  %s3258_s30 = smov 0  }
   0xa   :  { %s3260_s20 = smov 0   ;;  %s3262_s21 = smov 0  }
   0xb LB: > { %3821 = sst [smem:[#allocation5_spill]] %s3134_s0  ;;  %s3277_s1 = sadd.s32 4294967295, %s3146_s21   ;;  %s3146_s21 = sphi %s3262_s21, %s3841_s21   ;;  %s3142_s20 = sphi %s3260_s20, %s3843_s20   ;;  %s3138_s30 = sphi %s3258_s30, %s3845_s30   ;;  %s3134_s0 = sphi %s3256_s0, %s3844_s0  }
   0xc   : > { %3822 = sst [smem:[#allocation6_spill]] %s3142_s20  ;;  %s2540_s22 = sadd.s32 4294967294, %s3146_s21  }
   0xd   : > { %3823 = sst [smem:[#allocation7_spill]] %s3146_s21  ;;  %s3281_s2 = sadd.s32 1, %s3146_s21  }
   0xe   : > { %3824 = sst [smem:[#allocation8_spill]] %s3281_s2  ;;  %s443_s23 = sadd.s32 1, %s3142_s20 }
   0xf   : > { %s440_s24 = ssub.s32 %s3146_s21, %s3281_s2  ;;  %p453_p0 = scmp.ne.s32.totalorder %s3142_s20, %s3138_s30 }
  0x10   : > { %p441_p1 = scmp.eq.s32.totalorder %s440_s24, 0  ;;  %p454_p2 = scmp.eq.s32.totalorder %s3277_s1, 1 }
  0x11   : > { %p459_p3 = scmp.ne.s32.totalorder %s3138_s30, %s3134_s0  ;;  %p460_p4 = scmp.eq.s32.totalorder %s2540_s22, 1 }
  0x12   : > { %s3292_s25 = scalar_select %p441_p1, %s3142_s20, %s443_s23  }
  0x13   : > { %p3294_p5 = por %p454_p2, %p453_p0  ;;  %p3298_p6 = por %p460_p4, %p459_p3 }
  0x14   : > { %3825 = sst [smem:[#allocation9_spill]] %s3292_s25  ;;  %p2543_p7 = scmp.ge.s32.totalorder %s3146_s21, 1 }
  0x15   : > { %s3827_s26 = scalar_select %p3298_p6, 1, 0 }
  0x16   : > { %p540_p8 = scmp.lt.s32.totalorder %s3146_s21, 3 }
  0x17   : > { %3828 = sst [smem:[#allocation10_spill]] %s3827_s26 }
  0x18   : > { %p541_p9 = pnand %p2543_p7, %p540_p8 }
  0x19   : > { %s3829_s29 = sld [smem:[#allocation12_spill]] (!%p541_p9)  ;;  %p595_p10 = scmp.lt.s32.totalorder (!%p541_p9), %s3277_s1, 1  ;;  %vm1123_vm0 = vcmask (!%p541_p9), 261120   ;;  %vm3149_vm1 = vmmov (!%p541_p9), 0   ;;  %vm1227_vm2 = vcmask (!%p541_p9), 130048   ;;  %vm1294_vm3 = vcmask (!%p541_p9), 1043456  }
  0x1a   : > { %544 = sbr.rel (%p541_p9) target bundleno = 6212 (0x1844), region = 96  ;;  %s3830_s19 = sld [smem:[#allocation11_spill]] (!%p541_p9)  ;;  %vm1276_vm5 = vcmask (!%p541_p9), 64512   ;;  %vm1697_vm6 = vcmask (!%p541_p9), 523264   ;;  %vm2387_vm7 = vcmask (!%p541_p9), 253952   ;;  %vm2470_vm8 = vcmask (!%p541_p9), 73728  }
  0x1b   : > { %s3831_s0 = sld [smem:[#allocation13_spill]] (!%p541_p9)  ;;  %s3832_s5 = sld [smem:[#allocation16_spill]] (!%p541_p9) }
  0x1c   : > { %s3833_s23 = sld [smem:[#allocation14_spill]] (!%p541_p9)  ;;  %s3834_s4 = sld [smem:[#allocation15_spill]] (!%p541_p9) }
  0x1d   : > { %s3152_s26 = smov (!%p541_p9), 80   ;;  %s3154_s27 = smov (!%p541_p9), 48  }
  0x1e   : > { %s3836_s20 = sld [smem:[#allocation17_spill]] (!%p541_p9) }
  0x1f   : > { %v2980_v0 = vld [vmem:[%s3829_s29 + $0x40] sm:$0xff] (!%p541_p9)   ;;  %v2984_v4 = vld [vmem:[%s3829_s29 + $0x48] sm:$0xff] (!%p541_p9)   ;;  %v2988_v8 = vld [vmem:[%s3829_s29 + $0x50] sm:$0xff] (!%p541_p9)  }
  0x20   : > { %v2981_v1 = vld [vmem:[%s3829_s29] sm:$0xff] (!%p541_p9)   ;;  %2682 = vmatprep.subr.bf16.mxu0 (!%p541_p9), %v2980_v0  ;;  %v2985_v5 = vld [vmem:[%s3829_s29 + $0x8] sm:$0xff] (!%p541_p9)   ;;  %v2989_v9 = vld [vmem:[%s3829_s29 + $0x10] sm:$0xff] (!%p541_p9)  }
  0x21   : > { %v2982_v2 = vld [vmem:[%s3829_s29 + $0xc0] sm:$0xff]   ;;  %2683 = vmatpush3.bf16.msra.mxu0 %v2981_v1  ;;  %v2986_v6 = vld [vmem:[%s3829_s29 + $0xc8] sm:$0xff]   ;;  %v2990_v10 = vld [vmem:[%s3829_s29 + $0xd0] sm:$0xff]   ;;  %s596_s24 = scalar_select %p595_p10, %s3277_s1, 1 }
  0x22   : > { %v2983_v3 = vld [vmem:[%s3829_s29 + $0x80] sm:$0xff]   ;;  %2704 = vmatprep.subr.bf16.mxu1 %v2982_v2  ;;  %2684 = vmatprep.subr.bf16.mxu0 %v2984_v4  ;;  %v2987_v7 = vld [vmem:[%s3829_s29 + $0x88] sm:$0xff]   ;;  %v2991_v11 = vld [vmem:[%s3829_s29 + $0x90] sm:$0xff]  }
  0x23   : > { %2705 = vmatpush3.bf16.msra.mxu1 %v2983_v3  ;;  %v2992_v12 = vld [vmem:[%s3829_s29 + $0x58] sm:$0xff]   ;;  %v2996_v16 = vld [vmem:[%s3829_s29 + $0x60] sm:$0xff]   ;;  %v3000_v20 = vld [vmem:[%s3829_s29 + $0x68] sm:$0xff]   ;;  %s2933_s28 = smul.u32 48, %s596_s24  ;;  %s3153_s24 = smov 112  }
  0x24   : > { %2706 = vmatprep.subr.bf16.mxu1 %v2986_v6  ;;  %v2993_v13 = vld [vmem:[%s3829_s29 + $0x18] sm:$0xff]   ;;  %v2997_v17 = vld [vmem:[%s3829_s29 + $0x20] sm:$0xff]   ;;  %v3001_v21 = vld [vmem:[%s3829_s29 + $0x28] sm:$0xff]  }
  0x25   : > { %2685 = vmatpush3.bf16.msra.mxu0 %v2985_v5  ;;  %v2994_v14 = vld [vmem:[%s3829_s29 + $0xd8] sm:$0xff]   ;;  %v2998_v18 = vld [vmem:[%s3829_s29 + $0xe0] sm:$0xff]   ;;  %v3002_v22 = vld [vmem:[%s3829_s29 + $0xe8] sm:$0xff]   ;;  %s3396_s21 = scalar_lea.vmem %s3830_s19, %s2933_s28  ;;  %s593_s19 = sand.u32 1, %s3138_s30  }
  0x26   : > { %2686 = vmatprep.subr.bf16.mxu0 %v2988_v8  ;;  %v2995_v15 = vld [vmem:[%s3829_s29 + $0x98] sm:$0xff]   ;;  %v2999_v19 = vld [vmem:[%s3829_s29 + $0xa0] sm:$0xff]   ;;  %v3003_v23 = vld [vmem:[%s3829_s29 + $0xa8] sm:$0xff]   ;;  %s2679_s28 = sshll.u32 %s3277_s1, 4  ;;  %s3155_s1 = smov [#allocation2]  }
  0x27   : > { %2707 = vmatpush3.bf16.msra.mxu1 %v2987_v7  ;;  %v3004_v24 = vld [vmem:[%s3829_s29 + $0x70] sm:$0xff]   ;;  %v3008_v28 = vld [vmem:[%s3829_s29 + $0x78] sm:$0xff]   ;;  %v602_v31 = vld [vmem:[%s3396_s21 + $0x8] sm:$0xff] }
  0x28   : > { %2708 = vmatprep.subr.bf16.mxu1 %v2990_v10  ;;  %v3005_v25 = vld [vmem:[%s3829_s29 + $0x30] sm:$0xff]   ;;  %v3009_v29 = vld [vmem:[%s3829_s29 + $0x38] sm:$0xff]   ;;  %v704_v32 = vpack.c.bf16 %v602_v31, %v602_v31  ;;  %v601_v34 = vld [vmem:[%s3396_s21] sm:$0xff] }
  0x29   : > { %2687 = vmatpush3.bf16.msra.mxu0 %v2989_v9  ;;  %v3006_v26 = vld [vmem:[%s3829_s29 + $0xf0] sm:$0xff]   ;;  %v3010_v30 = vld [vmem:[%s3829_s29 + $0xf8] sm:$0xff]   ;;  %v703_v35 = vpack.c.bf16 %v601_v34, %v601_v34  ;;  %v3012_v36 = vld [vmem:[%s3829_s29 + $0x140] sm:$0xff]  }
  0x2a   : > { %2688 = vmatprep.subr.bf16.mxu0 %v2992_v12  ;;  %v3007_v27 = vld [vmem:[%s3829_s29 + $0xb0] sm:$0xff]   ;;  %v3011_v33 = vld [vmem:[%s3829_s29 + $0xb8] sm:$0xff]   ;;  %1030 = vmatprep.mubr.bf16.mxu0 %v704_v32  ;;  %v3013_v39 = vld [vmem:[%s3829_s29 + $0x100] sm:$0xff]  }
  0x2b   : > { %2709 = vmatpush3.bf16.msra.mxu1 %v2991_v11  ;;  %v604_v37 = vld [vmem:[%s3396_s21 + $0x18] sm:$0xff]  ;;  %v603_v40 = vld [vmem:[%s3396_s21 + $0x10] sm:$0xff]  ;;  %v3014_v42 = vld [vmem:[%s3829_s29 + $0x148] sm:$0xff]  }
  0x2c   : > { %2710 = vmatprep.subr.bf16.mxu1 %v2994_v14  ;;  %v706_v38 = vpack.c.bf16 %v604_v37, %v604_v37  ;;  %v705_v41 = vpack.c.bf16 %v603_v40, %v603_v40  ;;  %v3015_v43 = vld [vmem:[%s3829_s29 + $0x108] sm:$0xff]   ;;  %v3016_v44 = vld [vmem:[%s3829_s29 + $0x150] sm:$0xff]   ;;  %v3018_v46 = vld [vmem:[%s3829_s29 + $0x158] sm:$0xff]  }
  0x2d   : > { %2689 = vmatpush3.bf16.msra.mxu0 %v2993_v13  ;;  %v3017_v45 = vld [vmem:[%s3829_s29 + $0x110] sm:$0xff]   ;;  %v3019_v47 = vld [vmem:[%s3829_s29 + $0x118] sm:$0xff]   ;;  %v3020_v48 = vld [vmem:[%s3829_s29 + $0x160] sm:$0xff]  }
  0x2e   : > { %2690 = vmatprep.subr.bf16.mxu0 %v2996_v16  ;;  %1070 = vmatprep.mubr.bf16.mxu1 %v706_v38  ;;  %v3021_v49 = vld [vmem:[%s3829_s29 + $0x120] sm:$0xff]   ;;  %v3022_v50 = vld [vmem:[%s3829_s29 + $0x168] sm:$0xff]   ;;  %v3024_v54 = vld [vmem:[%s3829_s29 + $0x170] sm:$0xff]  }
  0x2f   : > { %2711 = vmatpush3.bf16.msra.mxu1 %v2995_v15  ;;  %v606_v51 = vld [vmem:[%s3396_s21 + $0x28] sm:$0xff]  ;;  %v3025_v55 = vld [vmem:[%s3829_s29 + $0x130] sm:$0xff]   ;;  %v3026_v56 = vld [vmem:[%s3829_s29 + $0x178] sm:$0xff]  }
  0x30   : > { %2712 = vmatprep.subr.bf16.mxu1 %v2998_v18  ;;  %v3023_v52 = vld [vmem:[%s3829_s29 + $0x128] sm:$0xff]   ;;  %v708_v53 = vpack.c.bf16 %v606_v51, %v606_v51  ;;  %v3027_v57 = vld [vmem:[%s3829_s29 + $0x138] sm:$0xff]   ;;  %v605_v58 = vld [vmem:[%s3396_s21 + $0x20] sm:$0xff]  ;;  %s3151_s21 = smov 96  }
  0x31   : > { %2691 = vmatpush3.bf16.msra.mxu0 %v2997_v17  ;;  %v707_v59 = vpack.c.bf16 %v605_v58, %v605_v58  ;;  %v709_v61 = vld [vmem:[%s3831_s0] sm:$0xff]  ;;  %s3813_s0 = smov 64  }
  0x32   : > { %2692 = vmatprep.subr.bf16.mxu0 %v3000_v20  ;;  %v2595_v34 = vld [vmem:[%s3790_s6] ss:$0 sm:$0xff] }
  0x33   : > { %2713 = vmatpush3.bf16.msra.mxu1 %v2999_v19 }
  0x34   : > { %2714 = vmatprep.subr.bf16.mxu1 %v3002_v22  ;;  %v3148_v22 = vmov 0.0  }
  0x35   : > { %2693 = vmatpush3.bf16.msra.mxu0 %v3001_v21  ;;  %v3028_v21 = vld [vmem:[%s3832_s5] sm:$0xff]  }
  0x36   : > { %2694 = vmatprep.subr.bf16.mxu0 %v3004_v24 }
  0x37   : > { %2715 = vmatpush3.bf16.msra.mxu1 %v3003_v23  ;;  %v3029_v23 = vld [vmem:[%s3832_s5 + $0x8] sm:$0xff]  }
  0x38   : > { %2716 = vmatprep.subr.bf16.mxu1 %v3006_v26 }
  0x39   : > { %2695 = vmatpush3.bf16.msra.mxu0 %v3005_v25 }
  0x3a   : > { %2696 = vmatprep.subr.bf16.mxu0 %v3008_v28  ;;  %v2593_v28 = vld [vmem:[%s3833_s23] ss:$0 sm:$0xff] }
  0x3b   : > { %2717 = vmatpush3.bf16.msra.mxu1 %v3007_v27 }
  0x3c   : > { %2718 = vmatprep.subr.bf16.mxu1 %v3010_v30  ;;  %v2594_v30 = vld [vmem:[%s3834_s4] ss:$0 sm:$0xff] }
  0x3d   : > { %2697 = vmatpush3.bf16.msra.mxu0 %v3009_v29 }
  0x3e   : > { %2726 = vmatprep.subr.bf16.mxu0 %v3012_v36 }
  0x3f   : > { %2719 = vmatpush3.bf16.msra.mxu1 %v3011_v33 }
  0x40   : > { %1031 = vmatmul.mubr.bf16.vlgmr.msra.gmra.mrb[0].mxu0 %v703_v35  ;;  %2797 = vmatprep.subr.bf16.mxu1 %v3148_v22 }
  0x41   : > { %2727 = vmatpush3.bf16.msra.mxu0 %v3013_v39  ;;  %1110 = vmatprep.mubr.bf16.mxu0 %v708_v53 }
  0x42   : > { %1071 = vmatmul.mubr.bf16.vlgmr.msra.gmra.mrb[0].mxu1 %v705_v41  ;;  %2728 = vmatprep.subr.bf16.mxu0 %v3014_v42 }
  0x43   : > { %2801 = vmatprep.mubr.msk.bf16.mxu1 %vm3149_vm1, %v3148_v22  ;;  %2798 = vmatpush3.bf16.msra.mxu1 %v3028_v21 }
  0x44   : > { %2799 = vmatprep.subr.bf16.mxu1 %v3148_v22 }
  0x45   : > { %2729 = vmatpush3.bf16.msra.mxu0 %v3015_v43 }
  0x46   : > { %2730 = vmatprep.subr.bf16.mxu0 %v3016_v44 }
  0x47   : > { %2800 = vmatpush3.bf16.msra.mxu1 %v3029_v23 }
  0x48   : > { %2805 = vmatprep.subr.bf16.mxu1 %v3148_v22 }
  0x49   : > { %2731 = vmatpush3.bf16.msra.mxu0 %v3017_v45  ;;  %v1118_v45 = vlaneseq }
  0x4a   : > { %2732 = vmatprep.subr.bf16.mxu0 %v3018_v46 }
  0x4b   : > { %v3510_v46 = vand.u32 127, %v1118_v45 }
  0x4d   : > { %2733 = vmatpush3.bf16.msra.mxu0 %v3019_v47  ;;  %vm1120_vm4 = vcmp.lt.s32.totalorder %v3510_v46, 5 }
  0x4e   : > { %2734 = vmatprep.subr.bf16.mxu0 %v3020_v48 }
  0x51   : > { %2735 = vmatpush3.bf16.msra.mxu0 %v3021_v49 }
  0x52   : > { %2736 = vmatprep.subr.bf16.mxu0 %v3022_v50 }
  0x55   : > { %2737 = vmatpush3.bf16.msra.mxu0 %v3023_v52 }
  0x56   : > { %2738 = vmatprep.subr.bf16.mxu0 %v3024_v54 }
  0x59   : > { %2739 = vmatpush3.bf16.msra.mxu0 %v3025_v55 }
  0x5a   : > { %2740 = vmatprep.subr.bf16.mxu0 %v3026_v56 }
  0x5d   : > { %2741 = vmatpush3.bf16.msra.mxu0 %v3027_v57 }
  0x5e   : > { %2823 = vmatprep.subr.bf16.mxu0 %v3148_v22 }
  0x60   : > { %1111 = vmatmul.mubr.bf16.vlgmr.msra.gmra.mrb[4].mxu0 %v707_v59 }
  0x61   : > { %2825 = vmatprep.mubr.msk.bf16.mxu0 %vm3149_vm1, %v3148_v22 }
 0x113   : > { %v2698_v60 = vpop.f32.mrb[0].mxu0 }
 0x114   : > { %v2699_v62 = vpop.f32.mrb[1].mxu0 }
 0x115   : > { %v2700_v63 = vadd.f32 %v2699_v62, %v2698_v60  ;;  %v2701_v0 = vpop.f32.mrb[2].mxu0  ;;  %v2720_v1 = vpop.f32.mrb[0].mxu1 }
 0x116   : > { %v2702_v2 = vpop.f32.mrb[3].mxu0  ;;  %v2721_v4 = vpop.f32.mrb[1].mxu1 }
 0x117   : > { %v1033_v3 = vadd.f32 %v2700_v63, %v709_v61  ;;  %v2722_v5 = vadd.f32 %v2721_v4, %v2720_v1  ;;  %v2723_v6 = vpop.f32.mrb[2].mxu1 }
 0x118   : > { %v2724_v7 = vpop.f32.mrb[3].mxu1 }
 0x119   : > { %v1073_v8 = vadd.f32 %v2722_v5, %v1033_v3 }
 0x133   : > { %v2742_v9 = vpop.f32.mrb[4].mxu0 }
 0x134   : > { %v2743_v10 = vpop.f32.mrb[5].mxu0 }
 0x135   : > { %v2744_v11 = vadd.f32 %v2743_v10, %v2742_v9  ;;  %v2745_v12 = vpop.f32.mrb[6].mxu0 }
 0x136   : > { %v2746_v13 = vpop.f32.mrb[7].mxu0 }
 0x137   : > { %v3464_v14 = vadd.f32 %v2744_v11, %v1073_v8 }
 0x139   : > { %v1124_v15 = vsel %vm1123_vm0, %v3464_v14, 0.0 }
 0x13a   : > { %1125 = vadd.xlane.f32.xlu0 %v1124_v15 }
 0x1c7   : > { %v1126_v16 = vpop.xlane.xlu0 %1125 }
 0x1c8   : > { %v1128_v17 = vmul.f32 0.03125, %v1126_v16 }
 0x1ca   : > { %v1129_v18 = vsub.f32 %v3464_v14, %v1128_v17 }
 0x1cc   : > { %v1130_v19 = vmul.f32 %v1129_v18, %v1129_v18 }
 0x1ce   : > { %v1131_v20 = vsel %vm1123_vm0, %v1130_v19, 0.0 }
 0x1cf   : > { %1132 = vadd.xlane.f32.xlu0 %v1131_v20 }
 0x25c   : > { %v1133_v24 = vpop.xlane.xlu0 %1132 }
 0x25d   : > { %v1134_v25 = vmul.f32 0.03125, %v1133_v24 }
 0x25f   : > { %v1135_v26 = vadd.f32 1e-12, %v1134_v25  ;;  %v3030_v25 = vld [vmem:[%s3791_s7] sm:$0xff]  }
 0x261   : > { %3050 = vrsqrt.f32 %v1135_v26 }
 0x26b   : > { %v3051_v27 = vpop.eup %3050 }
 0x26c   : > { %v1137_v29 = vmul.f32 %v3051_v27, %v1129_v18 }
 0x26e   : > { %v1144_v31 = vmul.f32 %v2593_v28, %v1137_v29  ;;  %v3031_v28 = vld [vmem:[%s3791_s7 + $0x8] sm:$0xff]  }
 0x270   : > { %v1151_v32 = vadd.f32 %v2594_v30, %v1144_v31 }
 0x272   : > { %v1156_v33 = vpack.c.bf16 %v1151_v32, %v1151_v32 }
 0x274   : > { %2802 = vmatmul.mubr.msk.bf16.vlgmr.msra.gmra.mrb[4].mxu1 %vm1123_vm0, %v1156_v33 }
 0x275   : > { %2807 = vmatprep.mubr.msk.bf16.mxu1 %vm3149_vm1, %v3148_v22 }
 0x347   : > { %v1213_v35 = vpop.f32.mrb[4].mxu1 }
 0x348   : > { %v1214_v36 = vadd.f32 %v2595_v34, %v1213_v35  ;;  %v2803_v37 = vpop.f32.mrb[5].mxu1 }
 0x349   : > { %v1216_v38 = vpop.f32.mrb[6].mxu1 }
 0x34a   : > { %v3496_v39 = vpack.c.bf16 %v1214_v36, %v1214_v36  ;;  %v2804_v40 = vpop.f32.mrb[7].mxu1 }
 0x34c   : > { %1289 = vrot.lane.b32.xlu0 %v3496_v39, %s3813_s0  ;;  %1225 = vrot.lane.b32.xlu1 %v3496_v39, %s3151_s21  ;;  %s594_s0 = scalar_lea.vmem [#allocation2], %s593_s19 }
 0x34d   : > { %s2485_s2 = sshll.u32 %s594_s0, 4  ;;  %s3744_s2 = int_to_ptr.vmem [resolvable:$true] %s2485_s2 }
 0x3be   : > { %v1226_v41 = vpop.permute.xlu1 %1225  ;;  %v1290_v43 = vpop.permute.xlu0 %1289 }
 0x3bf   : > { %v1232_v42 = vsel %vm1227_vm2, %v1226_v41, 0  ;;  %v1296_v44 = vsel %vm1294_vm3, %v1290_v43, 0  ;;  %v2607_v41 = vld [vmem:[%s3792_s8] ss:$0 sm:$0xff] }
 0x3c0   : > { %2806 = vmatpush3.bf16.xpose.msra.mxu1 %v1232_v42 }
 0x3c1   : > { %2811 = vmatprep.subr.bf16.mxu1 %v3148_v22 }
 0x3c7   : > { %2808 = vmatmul.mubr.msk.bf16.vlgmr.msra.gmra.mrb[8].mxu1 %vm1227_vm2, %v3496_v39 }
 0x3c8   : > { %2812 = vmatpush3.bf16.msra.mxu1 %v1296_v44  ;;  %2813 = vmatprep.mubr.msk.bf16.mxu1 %vm3149_vm1, %v3148_v22 }
 0x3c9   : > { %2817 = vmatprep.subr.bf16.mxu1 %v3148_v22 }
 0x49a   : > { %v1268_v47 = vpop.f32.mrb[8].mxu1 }
 0x49b   : > { %v1274_v48 = vmul.f32 0.25, %v1268_v47  ;;  %v2809_v49 = vpop.f32.mrb[9].mxu1 }
 0x49c   : > { %v1271_v50 = vpop.f32.mrb[10].mxu1 }
 0x49d   : > { %v2810_v51 = vpop.f32.mrb[11].mxu1  ;;  %v1275_v52 = vsel %vm1120_vm4, %v1274_v48, -1e+30 }
 0x49e   : > { %v1277_v53 = vsel %vm1276_vm5, %v1275_v52, -inf }
 0x49f   : > { %1278 = vmax.xlane.f32.xlu1 %v1277_v53  ;;  %v3032_v53 = vld [vmem:[%s3795_s11] sm:$0xff]  }
 0x52c   : > { %v1279_v54 = vpop.xlane.xlu1 %1278 }
 0x52d   : > { %v1280_v55 = vsub.f32 %v1275_v52, %v1279_v54 }
 0x52f   : > { %v1281_v56 = vmul.f32 1.442695, %v1280_v55 }
 0x531   : > { %3052 = vpow2.f32 %v1281_v56 }
 0x53b   : > { %v3053_v57 = vpop.eup %3052 }
 0x53c   : > { %v1283_v58 = vsel %vm1276_vm5, %v3053_v57, 0.0 }
 0x53d   : > { %1284 = vadd.xlane.f32.xlu0 %v1283_v58  ;;  %v2608_v58 = vld [vmem:[%s3793_s9] ss:$0 sm:$0xff] }
 0x553   : > { %1341 = vrot.lane.b32.xlu0 %v3496_v39, %s3152_s26 }
 0x557   : > { %1339 = vrot.lane.b32.xlu0 %v3496_v39, %s3153_s24 }
 0x5ca   : > { %v1285_v59 = vpop.xlane.xlu0 %1284 }
 0x5cb   : > { %3054 = vrcp.f32 %v1285_v59 }
 0x5ce   : > { %v1342_v62 = vpop.permute.xlu0 %1341 }
 0x5cf   : > { %v1347_v0 = vsel %vm1227_vm2, %v1342_v62, 0 }
 0x5d2   : > { %v1340_v1 = vpop.permute.xlu0 %1339 }
 0x5d5   : > { %v3055_v60 = vpop.eup %3054 }
 0x5d6   : > { %v1287_v61 = vmul.f32 %v3055_v60, %v3053_v57  ;;  %v2609_v60 = vld [vmem:[%s3794_s10] ss:$0 sm:$0xff] }
 0x5d8   : > { %v1288_v63 = vpack.c.bf16 %v1287_v61, %v1287_v61 }
 0x5da   : > { %2814 = vmatmul.mubr.msk.bf16.vlgmr.msra.gmra.mrb[12].mxu1 %vm1276_vm5, %v1288_v63 }
 0x5db   : > { %2818 = vmatpush3.bf16.xpose.msra.mxu1 %v1347_v0  ;;  %2819 = vmatprep.mubr.msk.bf16.mxu1 %vm3149_vm1, %v3148_v22  ;;  %v3034_v0 = vld [vmem:[%s3797_s13] sm:$0xff]  }
 0x5dc   : > { %2829 = vmatprep.subr.bf16.mxu1 %v3148_v22 }
 0x5e2   : > { %2820 = vmatmul.mubr.msk.bf16.vlgmr.msra.gmra.mrb[16].mxu1 %vm1227_vm2, %v1340_v1  ;;  %v3035_v1 = vld [vmem:[%s3797_s13 + $0x8] sm:$0xff]  }
 0x5e3   : > { %2831 = vmatprep.mubr.msk.bf16.mxu1 %vm3149_vm1, %v3148_v22  ;;  %2830 = vmatpush3.bf16.msra.mxu1 %v3031_v28 }
 0x5e4   : > { %2841 = vmatprep.subr.bf16.mxu1 %v3148_v22 }
 0x6ad   : > { %v1332_v2 = vpop.f32.mrb[12].mxu1 }
 0x6ae   : > { %v2815_v3 = vpop.f32.mrb[13].mxu1  ;;  %v1338_v27 = vpack.c.bf16 %v1332_v2, %v1332_v2  ;;  %v3036_v2 = vld [vmem:[%s3797_s13 + $0x10] sm:$0xff]  }
 0x6af   : > { %v1335_v4 = vpop.f32.mrb[14].mxu1  ;;  %v3037_v3 = vld [vmem:[%s3797_s13 + $0x18] sm:$0xff]  }
 0x6b0   : > { %v2816_v5 = vpop.f32.mrb[15].mxu1  ;;  %v2610_v4 = vld [vmem:[%s3796_s12] ss:$0 sm:$0xff] }
 0x6b5   : > { %v1383_v6 = vpop.f32.mrb[16].mxu1 }
 0x6b6   : > { %v1389_v7 = vmul.f32 0.25, %v1383_v6  ;;  %v2821_v8 = vpop.f32.mrb[17].mxu1 }
 0x6b7   : > { %v1386_v9 = vpop.f32.mrb[18].mxu1 }
 0x6b8   : > { %v2822_v10 = vpop.f32.mrb[19].mxu1  ;;  %v1390_v11 = vsel %vm1120_vm4, %v1389_v7, -1e+30 }
 0x6b9   : > { %v1391_v12 = vsel %vm1276_vm5, %v1390_v11, -inf }
 0x6ba   : > { %1392 = vmax.xlane.f32.xlu1 %v1391_v12 }
 0x6cb   : > { %1403 = vrot.lane.b32.xlu1 %v3496_v39, %s3154_s27 }
 0x747   : > { %v1393_v13 = vpop.xlane.xlu1 %1392 }
 0x748   : > { %v1394_v15 = vsub.f32 %v1390_v11, %v1393_v13 }
 0x74a   : > { %v1395_v16 = vmul.f32 1.442695, %v1394_v15 }
 0x74b   : > { %v1404_v17 = vpop.permute.xlu1 %1403 }
 0x74c   : > { %3056 = vpow2.f32 %v1395_v16  ;;  %v1409_v18 = vsel %vm1294_vm3, %v1404_v17, 0 }
 0x74d   : > { %2824 = vmatpush3.bf16.msra.mxu0 %v1409_v18 }
 0x74e   : > { %2835 = vmatprep.subr.bf16.mxu0 %v3148_v22 }
 0x756   : > { %v3057_v19 = vpop.eup %3056 }
 0x757   : > { %v1397_v20 = vsel %vm1276_vm5, %v3057_v19, 0.0 }
 0x758   : > { %1398 = vadd.xlane.f32.xlu0 %v1397_v20 }
 0x7e5   : > { %v1399_v21 = vpop.xlane.xlu0 %1398 }
 0x7e6   : > { %3058 = vrcp.f32 %v1399_v21 }
 0x7f0   : > { %v3059_v23 = vpop.eup %3058 }
 0x7f1   : > { %v1401_v24 = vmul.f32 %v3059_v23, %v3057_v19  ;;  %v2619_v23 = vld [vmem:[%s3798_s14] ss:$0 sm:$0xff] }
 0x7f3   : > { %v1402_v26 = vpack.c.bf16 %v1401_v24, %v1401_v24 }
 0x7f5   : > { %2826 = vmatmul.mubr.msk.bf16.vlgmr.msra.gmra.mrb[8].mxu0 %vm1276_vm5, %v1402_v26 }
 0x7f6   : > { %2836 = vmatpush3.bf16.msra.mxu0 %v3030_v25  ;;  %2837 = vmatprep.mubr.msk.bf16.mxu0 %vm3149_vm1, %v3148_v22 }
 0x7f7   : > { %2849 = vmatprep.subr.bf16.mxu0 %v3148_v22 }
 0x7fd   : > { %2838 = vmatmul.mubr.msk.bf16.vlgmr.msra.gmra.mrb[12].mxu0 %vm1227_vm2, %v1338_v27 }
 0x7fe   : > { %2857 = vmatprep.mubr.msk.bf16.mxu0 %vm3149_vm1, %v3148_v22  ;;  %2850 = vmatpush3.bf16.msra.mxu0 %v3034_v0 }
 0x7ff   : > { %2851 = vmatprep.subr.bf16.mxu0 %v3148_v22 }
 0x802   : > { %2852 = vmatpush3.bf16.msra.mxu0 %v3035_v1 }
 0x803   : > { %2853 = vmatprep.subr.bf16.mxu0 %v3148_v22 }
 0x806   : > { %2854 = vmatpush3.bf16.msra.mxu0 %v3036_v2 }
 0x807   : > { %2855 = vmatprep.subr.bf16.mxu0 %v3148_v22 }
 0x80a   : > { %2856 = vmatpush3.bf16.msra.mxu0 %v3037_v3 }
 0x80b   : > { %2875 = vmatprep.subr.bf16.mxu0 %v3148_v22 }
 0x8c8   : > { %v1445_v29 = vpop.f32.mrb[8].mxu0 }
 0x8c9   : > { %v1451_v30 = vpack.c.bf16 %v1445_v29, %v1445_v29  ;;  %v2827_v31 = vpop.f32.mrb[9].mxu0 }
 0x8ca   : > { %v1448_v32 = vpop.f32.mrb[10].mxu0 }
 0x8cb   : > { %v2828_v33 = vpop.f32.mrb[11].mxu0  ;;  %2832 = vmatmul.mubr.msk.bf16.vlgmr.msra.gmra.mrb[20].mxu1 %vm1227_vm2, %v1451_v30 }
 0x8cc   : > { %2845 = vmatprep.mubr.msk.bf16.mxu1 %vm3149_vm1, %v3148_v22  ;;  %2842 = vmatpush3.bf16.msra.mxu1 %v3032_v53 }
 0x8cd   : > { %2843 = vmatprep.subr.bf16.mxu1 %v3148_v22 }
 0x8d0   : > { %v1544_v34 = vpop.f32.mrb[12].mxu0 }
 0x8d1   : > { %v2839_v35 = vpop.f32.mrb[13].mxu0 }
 0x8d2   : > { %v1547_v36 = vpop.f32.mrb[14].mxu0  ;;  %v3038_v35 = vld [vmem:[%s3832_s5 + $0x10] sm:$0xff]  }
 0x8d3   : > { %v2840_v37 = vpop.f32.mrb[15].mxu0  ;;  %v3039_v36 = vld [vmem:[%s3832_s5 + $0x18] sm:$0xff]  }
 0x99e   : > { %v1495_v38 = vpop.f32.mrb[20].mxu1 }
 0x99f   : > { %v1545_v39 = vadd.f32 %v1544_v34, %v1495_v38  ;;  %v2833_v40 = vpop.f32.mrb[21].mxu1 }
 0x9a0   : > { %v1498_v42 = vpop.f32.mrb[22].mxu1 }
 0x9a1   : > { %v1550_v43 = vadd.f32 %v1545_v39, %v3464_v14  ;;  %v2834_v44 = vpop.f32.mrb[23].mxu1  ;;  %v3033_v14 = vld [vmem:[%s3795_s11 + $0x8] sm:$0xff]  }
 0x9a2   : > { %2844 = vmatpush3.bf16.msra.mxu1 %v3033_v14 }
 0x9a3   : > { %v1558_v45 = vadd.f32 %v2607_v41, %v1550_v43  ;;  %2861 = vmatprep.subr.bf16.mxu1 %v3148_v22  ;;  %v2622_v41 = vld [vmem:[%s3833_s23 + $0x1] ss:$0 sm:$0xff] }
 0x9a4   : > { %v2623_v43 = vld [vmem:[%s3834_s4 + $0x1] ss:$0 sm:$0xff]  ;;  %s3088_s4 = sshll.u32 %s3155_s1, 4  ;;  %s3089_s4 = int_to_ptr.vmem [resolvable:$false] %s3088_s4 }
 0x9a5   : > { %v1561_v47 = vsel %vm1123_vm0, %v1558_v45, 0.0  ;;  %s3090_s5 = scalar_lea.vmem %s3089_s4, 32  ;;  %p3091_p0 = scmp.lt.s32.totalorder %s3744_s2, %s3089_s4 }
 0x9a6   : > { %1562 = vadd.xlane.f32.xlu1 %v1561_v47 }
 0xa33   : > { %v1563_v48 = vpop.xlane.xlu1 %1562 }
 0xa34   : > { %v1564_v49 = vmul.f32 0.03125, %v1563_v48  ;;  %v2629_v48 = vld [vmem:[%s3790_s6 + $0x1] ss:$0 sm:$0xff] }
 0xa36   : > { %v1565_v50 = vsub.f32 %v1558_v45, %v1564_v49 }
 0xa38   : > { %v1566_v51 = vmul.f32 %v1565_v50, %v1565_v50 }
 0xa3a   : > { %v1567_v52 = vsel %vm1123_vm0, %v1566_v51, 0.0 }
 0xa3b   : > { %1568 = vadd.xlane.f32.xlu0 %v1567_v52 }
 0xac8   : > { %v1569_v54 = vpop.xlane.xlu0 %1568 }
 0xac9   : > { %v1570_v55 = vmul.f32 0.03125, %v1569_v54 }
 0xacb   : > { %v1571_v56 = vadd.f32 1e-12, %v1570_v55 }
 0xacd   : > { %3060 = vrsqrt.f32 %v1571_v56 }
 0xad7   : > { %v3061_v57 = vpop.eup %3060 }
 0xad8   : > { %v1573_v59 = vmul.f32 %v3061_v57, %v1565_v50 }
 0xada   : > { %v1580_v61 = vmul.f32 %v2608_v58, %v1573_v59 }
 0xadc   : > { %v1587_v62 = vadd.f32 %v2609_v60, %v1580_v61 }
 0xade   : > { %v1592_v63 = vpack.c.bf16 %v1587_v62, %v1587_v62 }
 0xae0   : > { %2846 = vmatmul.mubr.msk.bf16.vlgmr.msra.gmra.mrb[24].mxu1 %vm1123_vm0, %v1592_v63 }
 0xae1   : > { %2865 = vmatprep.mubr.msk.bf16.mxu1 %vm3149_vm1, %v3148_v22  ;;  %2862 = vmatpush3.bf16.msra.mxu1 %v3038_v35 }
 0xae2   : > { %2863 = vmatprep.subr.bf16.mxu1 %v3148_v22 }
 0xae5   : > { %2864 = vmatpush3.bf16.msra.mxu1 %v3039_v36 }
 0xae6   : > { %2869 = vmatprep.subr.bf16.mxu1 %v3148_v22 }
 0xbb3   : > { %v1649_v5 = vpop.f32.mrb[24].mxu1 }
 0xbb4   : > { %v1650_v6 = vadd.f32 %v2610_v4, %v1649_v5  ;;  %v2847_v7 = vpop.f32.mrb[25].mxu1 }
 0xbb5   : > { %v1652_v8 = vpop.f32.mrb[26].mxu1 }
 0xbb6   : > { %v1655_v9 = vmul.f32 %v1650_v6, %v1650_v6  ;;  %v2848_v10 = vpop.f32.mrb[27].mxu1 }
 0xbb8   : > { %v1656_v11 = vmul.f32 %v1655_v9, %v1650_v6 }
 0xbba   : > { %v1657_v12 = vmul.f32 0.044715, %v1656_v11 }
 0xbbc   : > { %v1658_v13 = vadd.f32 %v1657_v12, %v1650_v6 }
 0xbbe   : > { %v1659_v15 = vmul.f32 0.7978846, %v1658_v13 }
 0xbc0   : > { %3062 = vtanh.f32 %v1659_v15 }
 0xbca   : > { %v3063_v16 = vpop.eup %3062 }
 0xbcb   : > { %v1661_v17 = vadd.f32 1.0, %v3063_v16 }
 0xbcd   : > { %v1662_v18 = vmul.f32 0.5, %v1661_v17 }
 0xbcf   : > { %v1663_v19 = vmul.f32 %v1662_v18, %v1650_v6 }
 0xbd1   : > { %v1672_v20 = vpack.c.bf16 %v1663_v19, %v1663_v19 }
 0xbd3   : > { %2858 = vmatmul.mubr.msk.bf16.vlgmr.msra.gmra.mrb[16].mxu0 %vm1697_vm6, %v1672_v20 }
 0xbd4   : > { %2877 = vmatprep.mubr.msk.bf16.mxu0 %vm3149_vm1, %v3148_v22 }
 0xca6   : > { %v1735_v21 = vpop.f32.mrb[16].mxu0 }
 0xca7   : > { %v1741_v24 = vadd.f32 %v1735_v21, %v1558_v45  ;;  %v2859_v25 = vpop.f32.mrb[17].mxu0 }
 0xca8   : > { %v1738_v26 = vpop.f32.mrb[18].mxu0 }
 0xca9   : > { %v3602_v27 = vadd.f32 %v2619_v23, %v1741_v24  ;;  %v2860_v28 = vpop.f32.mrb[19].mxu0 }
 0xcab   : > { %v1754_v29 = vsel %vm1123_vm0, %v3602_v27, 0.0 }
 0xcac   : > { %1755 = vadd.xlane.f32.xlu0 %v1754_v29 }
 0xd39   : > { %v1756_v30 = vpop.xlane.xlu0 %1755 }
 0xd3a   : > { %v1757_v31 = vmul.f32 0.03125, %v1756_v30 }
 0xd3c   : > { %v1758_v32 = vsub.f32 %v3602_v27, %v1757_v31 }
 0xd3e   : > { %v1759_v33 = vmul.f32 %v1758_v32, %v1758_v32 }
 0xd40   : > { %v1760_v34 = vsel %vm1123_vm0, %v1759_v33, 0.0  ;;  %v3040_v33 = vld [vmem:[%s3791_s7 + $0x10] sm:$0xff]  }
 0xd41   : > { %1761 = vadd.xlane.f32.xlu0 %v1760_v34  ;;  %v3041_v34 = vld [vmem:[%s3791_s7 + $0x18] sm:$0xff]  }
 0xdce   : > { %v1762_v37 = vpop.xlane.xlu0 %1761 }
 0xdcf   : > { %v1763_v38 = vmul.f32 0.03125, %v1762_v37 }
 0xdd1   : > { %v1764_v39 = vadd.f32 1e-12, %v1763_v38 }
 0xdd3   : > { %3064 = vrsqrt.f32 %v1764_v39 }
 0xddd   : > { %v3065_v40 = vpop.eup %3064 }
 0xdde   : > { %v1766_v42 = vmul.f32 %v3065_v40, %v1758_v32 }
 0xde0   : > { %v1773_v44 = vmul.f32 %v2622_v41, %v1766_v42 }
 0xde2   : > { %v1780_v45 = vadd.f32 %v2623_v43, %v1773_v44 }
 0xde4   : > { %v1786_v47 = vpack.c.bf16 %v1780_v45, %v1780_v45 }
 0xde6   : > { %2866 = vmatmul.mubr.msk.bf16.vlgmr.msra.gmra.mrb[28].mxu1 %vm1123_vm0, %v1786_v47 }
 0xde7   : > { %2871 = vmatprep.mubr.msk.bf16.mxu1 %vm3149_vm1, %v3148_v22 }
 0xeb9   : > { %v1844_v49 = vpop.f32.mrb[28].mxu1 }
 0xeba   : > { %v1845_v50 = vadd.f32 %v2629_v48, %v1844_v49  ;;  %v2867_v51 = vpop.f32.mrb[29].mxu1 }
 0xebb   : > { %v1847_v52 = vpop.f32.mrb[30].mxu1 }
 0xebc   : > { %v1855_v53 = vpack.c.bf16 %v1845_v50, %v1845_v50  ;;  %v2868_v14 = vpop.f32.mrb[31].mxu1 }
 0xebe   : > { %1970 = vrot.lane.b32.xlu1 %v1855_v53, %s3152_s26  ;;  %1857 = vrot.lane.b32.xlu0 %v1855_v53, %s3151_s21  ;;  %s3835_s21 = smov 64   ;;  %s3837_s26 = smov %s3836_s20 }
 0xec2   : > { %1968 = vrot.lane.b32.xlu0 %v1855_v53, %s3153_s24  ;;  %s2473_s24 = scalar_lea.sflag [#allocation3], %s593_s19 }
 0xf30   : > { %v1858_v54 = vpop.permute.xlu0 %1857  ;;  %v1971_v56 = vpop.permute.xlu1 %1970 }
 0xf31   : > { %v1863_v55 = vsel %vm1227_vm2, %v1858_v54, 0  ;;  %v1976_v57 = vsel %vm1227_vm2, %v1971_v56, 0 }
 0xf32   : > { %2870 = vmatpush3.bf16.xpose.msra.mxu1 %v1863_v55 }
 0xf33   : > { %2881 = vmatprep.subr.bf16.mxu1 %v3148_v22 }
 0xf34   : > { %v1969_v58 = vpop.permute.xlu0 %1968 }
 0xf39   : > { %2872 = vmatmul.mubr.msk.bf16.vlgmr.msra.gmra.mrb[32].mxu1 %vm1227_vm2, %v1855_v53 }
 0xf3a   : > { %2882 = vmatpush3.bf16.xpose.msra.mxu1 %v1976_v57  ;;  %2883 = vmatprep.mubr.msk.bf16.mxu1 %vm3149_vm1, %v3148_v22 }
 0xf3b   : > { %2893 = vmatprep.subr.bf16.mxu1 %v3148_v22 }
 0xf41   : > { %2884 = vmatmul.mubr.msk.bf16.vlgmr.msra.gmra.mrb[36].mxu1 %vm1227_vm2, %v1969_v58 }
 0xf42   : > { %2895 = vmatprep.mubr.msk.bf16.mxu1 %vm3149_vm1, %v3148_v22  ;;  %2894 = vmatpush3.bf16.msra.mxu1 %v3041_v34 }
 0xf43   : > { %2905 = vmatprep.subr.bf16.mxu1 %v3148_v22 }
0x100c   : > { %v1899_v59 = vpop.f32.mrb[32].mxu1 }
0x100d   : > { %v1905_v60 = vmul.f32 0.25, %v1899_v59  ;;  %v2873_v61 = vpop.f32.mrb[33].mxu1 }
0x100e   : > { %v1902_v62 = vpop.f32.mrb[34].mxu1 }
0x100f   : > { %v2874_v63 = vpop.f32.mrb[35].mxu1  ;;  %v1906_v0 = vsel %vm1120_vm4, %v1905_v60, -1e+30 }
0x1010   : > { %v1907_v1 = vsel %vm1276_vm5, %v1906_v0, -inf  ;;  %v3042_v63 = vld [vmem:[%s3795_s11 + $0x10] sm:$0xff]  }
0x1011   : > { %1908 = vmax.xlane.f32.xlu0 %v1907_v1 }
0x1014   : > { %v2012_v2 = vpop.f32.mrb[36].mxu1 }
0x1015   : > { %v2018_v3 = vmul.f32 0.25, %v2012_v2  ;;  %v2885_v4 = vpop.f32.mrb[37].mxu1 }
0x1016   : > { %v2015_v5 = vpop.f32.mrb[38].mxu1  ;;  %v2649_v4 = vld [vmem:[%s3793_s9 + $0x1] ss:$0 sm:$0xff] }
0x1017   : > { %v2886_v6 = vpop.f32.mrb[39].mxu1  ;;  %v2019_v7 = vsel %vm1120_vm4, %v2018_v3, -1e+30 }
0x1018   : > { %v2020_v8 = vsel %vm1276_vm5, %v2019_v7, -inf  ;;  %v2650_v6 = vld [vmem:[%s3794_s10 + $0x1] ss:$0 sm:$0xff] }
0x1019   : > { %2021 = vmax.xlane.f32.xlu1 %v2020_v8 }
0x102a   : > { %2032 = vrot.lane.b32.xlu1 %v1855_v53, %s3154_s27  ;;  %s3084_s27 = scalar_lea.vmem %s3744_s2, 16 }
0x102b   : > { %p3085_p11 = scmp.ne.s32.totalorder %s3744_s2, %s3084_s27  ;;  %p3092_p1 = scmp.lt.s32.totalorder %s3090_s5, %s3084_s27 }
0x102d   : > { %p3086_p12 = pnand %p3085_p11, %p3294_p5  ;;  %p3093_p2 = por %p3092_p1, %p3091_p0 }
0x102f   : > { %p3087_p13 = pneg %p3086_p12 }
0x1031   : > { %p3094_p3 = pnand %p3093_p2, %p3087_p13 }
0x109e   : > { %v1909_v9 = vpop.xlane.xlu0 %1908 }
0x109f   : > { %v1910_v10 = vsub.f32 %v1906_v0, %v1909_v9 }
0x10a1   : > { %v1911_v11 = vmul.f32 1.442695, %v1910_v10  ;;  %v3044_v10 = vld [vmem:[%s3797_s13 + $0x20] sm:$0xff]  }
0x10a3   : > { %3066 = vpow2.f32 %v1911_v11  ;;  %v3045_v11 = vld [vmem:[%s3797_s13 + $0x28] sm:$0xff]  }
0x10a6   : > { %v2022_v12 = vpop.xlane.xlu1 %2021 }
0x10a7   : > { %v2023_v13 = vsub.f32 %v2019_v7, %v2022_v12  ;;  %v3046_v12 = vld [vmem:[%s3797_s13 + $0x30] sm:$0xff]  }
0x10a9   : > { %v2024_v15 = vmul.f32 1.442695, %v2023_v13  ;;  %v3047_v13 = vld [vmem:[%s3797_s13 + $0x38] sm:$0xff]  }
0x10aa   : > { %v2033_v26 = vpop.permute.xlu1 %2032 }
0x10ab   : > { %3068 = vpow2.f32 %v2024_v15  ;;  %v2038_v29 = vsel %vm1294_vm3, %v2033_v26, 0  ;;  %v2656_v15 = vld [vmem:[%s3796_s12 + $0x1] ss:$0 sm:$0xff] }
0x10ad   : > { %v3067_v16 = vpop.eup %3066 }
0x10ae   : > { %v1913_v17 = vsel %vm1276_vm5, %v3067_v16, 0.0 }
0x10af   : > { %1914 = vadd.xlane.f32.xlu0 %v1913_v17 }
0x10b5   : > { %v3069_v18 = vpop.eup %3068 }
0x10b6   : > { %v2026_v46 = vsel %vm1276_vm5, %v3069_v18, 0.0 }
0x10b7   : > { %2027 = vadd.xlane.f32.xlu0 %v2026_v46 }
0x10cd   : > { %1919 = vrot.lane.b32.xlu0 %v1855_v53, %s3835_s21  ;;  %v2646_v53 = vld [vmem:[%s3792_s8 + $0x1] ss:$0 sm:$0xff]  ;;  %s3742_s21 = scalar_lea.hbm %s3836_s20, %s2679_s28 }
0x113c   : > { %v1915_v19 = vpop.xlane.xlu0 %1914 }
0x113d   : > { %3070 = vrcp.f32 %v1915_v19 }
0x1144   : > { %v2028_v20 = vpop.xlane.xlu0 %2027 }
0x1145   : > { %3072 = vrcp.f32 %v2028_v20 }
0x1147   : > { %v3071_v21 = vpop.eup %3070 }
0x1148   : > { %v1917_v23 = vmul.f32 %v3071_v21, %v3067_v16  ;;  %v1920_v24 = vpop.permute.xlu0 %1919 }
0x1149   : > { %v1925_v25 = vsel %vm1294_vm3, %v1920_v24, 0 }
0x114a   : > { %2876 = vmatpush3.bf16.msra.mxu0 %v1925_v25  ;;  %v1918_v28 = vpack.c.bf16 %v1917_v23, %v1917_v23 }
0x114b   : > { %2887 = vmatprep.subr.bf16.mxu0 %v3148_v22 }
0x114d   : > { %2878 = vmatmul.mubr.msk.bf16.vlgmr.msra.gmra.mrb[20].mxu0 %vm1276_vm5, %v1918_v28 }
0x114e   : > { %2888 = vmatpush3.bf16.msra.mxu0 %v2038_v29  ;;  %2889 = vmatprep.mubr.msk.bf16.mxu0 %vm3149_vm1, %v3148_v22 }
0x114f   : > { %v3073_v30 = vpop.eup %3072  ;;  %2899 = vmatprep.subr.bf16.mxu0 %v3148_v22 }
0x1150   : > { %v2030_v31 = vmul.f32 %v3073_v30, %v3069_v18 }
0x1152   : > { %v2031_v32 = vpack.c.bf16 %v2030_v31, %v2030_v31 }
0x1155   : > { %2890 = vmatmul.mubr.msk.bf16.vlgmr.msra.gmra.mrb[24].mxu0 %vm1276_vm5, %v2031_v32 }
0x1156   : > { %2901 = vmatprep.mubr.msk.bf16.mxu0 %vm3149_vm1, %v3148_v22  ;;  %2900 = vmatpush3.bf16.msra.mxu0 %v3040_v33  ;;  %v2674_v33 = vld [vmem:[%s3798_s14 + $0x1] ss:$0 sm:$0xff] }
0x1157   : > { %2913 = vmatprep.subr.bf16.mxu0 %v3148_v22 }
0x1220   : > { %v1961_v35 = vpop.f32.mrb[20].mxu0 }
0x1221   : > { %v1967_v36 = vpack.c.bf16 %v1961_v35, %v1961_v35  ;;  %v2879_v37 = vpop.f32.mrb[21].mxu0 }
0x1222   : > { %v1964_v38 = vpop.f32.mrb[22].mxu0 }
0x1223   : > { %v2880_v39 = vpop.f32.mrb[23].mxu0  ;;  %2902 = vmatmul.mubr.msk.bf16.vlgmr.msra.gmra.mrb[28].mxu0 %vm1227_vm2, %v1967_v36 }
0x1224   : > { %2921 = vmatprep.mubr.msk.bf16.mxu0 %vm3149_vm1, %v3148_v22  ;;  %2914 = vmatpush3.bf16.msra.mxu0 %v3044_v10 }
0x1225   : > { %2915 = vmatprep.subr.bf16.mxu0 %v3148_v22 }
0x1228   : > { %v2074_v40 = vpop.f32.mrb[24].mxu0  ;;  %2916 = vmatpush3.bf16.msra.mxu0 %v3045_v11 }
0x1229   : > { %v2080_v41 = vpack.c.bf16 %v2074_v40, %v2074_v40  ;;  %v2891_v42 = vpop.f32.mrb[25].mxu0  ;;  %2917 = vmatprep.subr.bf16.mxu0 %v3148_v22 }
0x122a   : > { %v2077_v43 = vpop.f32.mrb[26].mxu0 }
0x122b   : > { %v2892_v44 = vpop.f32.mrb[27].mxu0  ;;  %2896 = vmatmul.mubr.msk.bf16.vlgmr.msra.gmra.mrb[40].mxu1 %vm1227_vm2, %v2080_v41 }
0x122c   : > { %2909 = vmatprep.mubr.msk.bf16.mxu1 %vm3149_vm1, %v3148_v22  ;;  %2906 = vmatpush3.bf16.msra.mxu1 %v3042_v63 }
0x122d   : > { %2907 = vmatprep.subr.bf16.mxu1 %v3148_v22  ;;  %2918 = vmatpush3.bf16.msra.mxu0 %v3046_v12 }
0x122e   : > { %2919 = vmatprep.subr.bf16.mxu0 %v3148_v22 }
0x1231   : > { %2920 = vmatpush3.bf16.msra.mxu0 %v3047_v13 }
0x12f6   : > { %v2173_v45 = vpop.f32.mrb[28].mxu0 }
0x12f7   : > { %v2903_v47 = vpop.f32.mrb[29].mxu0 }
0x12f8   : > { %v2176_v48 = vpop.f32.mrb[30].mxu0  ;;  %v3049_v47 = vld [vmem:[%s3801_s17 + $0x8] sm:$0xff]  }
0x12f9   : > { %v2904_v49 = vpop.f32.mrb[31].mxu0 }
0x12fe   : > { %v2124_v50 = vpop.f32.mrb[40].mxu1 }
0x12ff   : > { %v2174_v51 = vadd.f32 %v2173_v45, %v2124_v50  ;;  %v2897_v52 = vpop.f32.mrb[41].mxu1  ;;  %v3048_v45 = vld [vmem:[%s3801_s17] sm:$0xff]  }
0x1300   : > { %v2127_v14 = vpop.f32.mrb[42].mxu1  ;;  %v2385_v52 = vld [vmem:[%s3799_s15] sm:$0x1] }
0x1301   : > { %v2179_v54 = vadd.f32 %v2174_v51, %v3602_v27  ;;  %v2898_v55 = vpop.f32.mrb[43].mxu1  ;;  %v3043_v27 = vld [vmem:[%s3795_s11 + $0x18] sm:$0xff]   ;;  %v2386_v14 = vld [vmem:[%s3800_s16] sm:$0x1] }
0x1302   : > { %2908 = vmatpush3.bf16.msra.mxu1 %v3043_v27 }
0x1303   : > { %v2188_v56 = vadd.f32 %v2646_v53, %v2179_v54  ;;  %2925 = vmatprep.subr.bf16.mxu1 %v3148_v22 }
0x1305   : > { %v2193_v57 = vsel %vm1123_vm0, %v2188_v56, 0.0 }
0x1306   : > { %2194 = vadd.xlane.f32.xlu1 %v2193_v57 }
0x1393   : > { %v2195_v58 = vpop.xlane.xlu1 %2194 }
0x1394   : > { %v2196_v59 = vmul.f32 0.03125, %v2195_v58 }
0x1396   : > { %v2197_v60 = vsub.f32 %v2188_v56, %v2196_v59 }
0x1398   : > { %v2198_v61 = vmul.f32 %v2197_v60, %v2197_v60 }
0x139a   : > { %v2199_v62 = vsel %vm1123_vm0, %v2198_v61, 0.0 }
0x139b   : > { %2200 = vadd.xlane.f32.xlu0 %v2199_v62 }
0x1428   : > { %v2201_v0 = vpop.xlane.xlu0 %2200 }
0x1429   : > { %v2202_v1 = vmul.f32 0.03125, %v2201_v0 }
0x142b   : > { %v2203_v2 = vadd.f32 1e-12, %v2202_v1 }
0x142d   : > { %3074 = vrsqrt.f32 %v2203_v2 }
0x1437   : > { %v3075_v3 = vpop.eup %3074 }
0x1438   : > { %v2205_v5 = vmul.f32 %v3075_v3, %v2197_v60 }
0x143a   : > { %v2212_v7 = vmul.f32 %v2649_v4, %v2205_v5 }
0x143c   : > { %v2219_v8 = vadd.f32 %v2650_v6, %v2212_v7 }
0x143e   : > { %v2225_v9 = vpack.c.bf16 %v2219_v8, %v2219_v8 }
0x1440   : > { %2910 = vmatmul.mubr.msk.bf16.vlgmr.msra.gmra.mrb[44].mxu1 %vm1123_vm0, %v2225_v9 }
0x1441   : > { %2929 = vmatprep.mubr.msk.bf16.mxu1 %vm3149_vm1, %v3148_v22  ;;  %2926 = vmatpush3.bf16.msra.mxu1 %v3048_v45 }
0x1442   : > { %2927 = vmatprep.subr.bf16.mxu1 %v3148_v22 }
0x1445   : > { %2928 = vmatpush3.bf16.msra.mxu1 %v3049_v47 }
0x1513   : > { %v2283_v16 = vpop.f32.mrb[44].mxu1 }
0x1514   : > { %v2284_v17 = vadd.f32 %v2656_v15, %v2283_v16  ;;  %v2911_v18 = vpop.f32.mrb[45].mxu1 }
0x1515   : > { %v2286_v46 = vpop.f32.mrb[46].mxu1 }
0x1516   : > { %v2289_v19 = vmul.f32 %v2284_v17, %v2284_v17  ;;  %v2912_v20 = vpop.f32.mrb[47].mxu1 }
0x1518   : > { %v2290_v21 = vmul.f32 %v2289_v19, %v2284_v17 }
0x151a   : > { %v2291_v23 = vmul.f32 0.044715, %v2290_v21 }
0x151c   : > { %v2292_v24 = vadd.f32 %v2291_v23, %v2284_v17 }
0x151e   : > { %v2293_v25 = vmul.f32 0.7978846, %v2292_v24 }
0x1520   : > { %3076 = vtanh.f32 %v2293_v25 }
0x152a   : > { %v3077_v26 = vpop.eup %3076 }
0x152b   : > { %v2295_v28 = vadd.f32 1.0, %v3077_v26 }
0x152d   : > { %v2296_v29 = vmul.f32 0.5, %v2295_v28 }
0x152f   : > { %v2297_v30 = vmul.f32 %v2296_v29, %v2284_v17 }
0x1531   : > { %v2307_v31 = vpack.c.bf16 %v2297_v30, %v2297_v30 }
0x1533   : > { %2922 = vmatmul.mubr.msk.bf16.vlgmr.msra.gmra.mrb[32].mxu0 %vm1697_vm6, %v2307_v31 }
0x1606   : > { %v2369_v32 = vpop.f32.mrb[32].mxu0 }
0x1607   : > { %v2375_v34 = vadd.f32 %v2369_v32, %v2188_v56  ;;  %v2923_v35 = vpop.f32.mrb[33].mxu0  ;;  %v2408_v56 = vld [vmem:[%s3802_s18] sm:$0x1] }
0x1608   : > { %v2372_v36 = vpop.f32.mrb[34].mxu0 }
0x1609   : > { %v2924_v37 = vpop.f32.mrb[35].mxu0  ;;  %v2384_v38 = vadd.f32 %v2674_v33, %v2375_v34 }
0x160b   : > { %v2388_v39 = vsel %vm2387_vm7, %v2384_v38, 0.0 }
0x160c   : > { %2389 = vadd.xlane.f32.xlu0 %v2388_v39 }
0x1699   : > { %v2390_v40 = vpop.xlane.xlu0 %2389 }
0x169a   : > { %v2391_v41 = vmul.f32 0.03125, %v2390_v40 }
0x169c   : > { %v2392_v42 = vsub.f32 %v2384_v38, %v2391_v41 }
0x169e   : > { %v2393_v43 = vmul.f32 %v2392_v42, %v2392_v42 }
0x16a0   : > { %v2394_v44 = vsel %vm2387_vm7, %v2393_v43, 0.0 }
0x16a1   : > { %2395 = vadd.xlane.f32.xlu1 %v2394_v44 }
0x172e   : > { %v2396_v48 = vpop.xlane.xlu1 %2395 }
0x172f   : > { %v2397_v49 = vmul.f32 0.03125, %v2396_v48 }
0x1731   : > { %v2398_v50 = vadd.f32 1e-12, %v2397_v49 }
0x1733   : > { %3078 = vrsqrt.f32 %v2398_v50 }
0x173d   : > { %v3079_v51 = vpop.eup %3078 }
0x173e   : > { %v2400_v53 = vmul.f32 %v3079_v51, %v2392_v42 }
0x1740   : > { %v2401_v54 = vmul.f32 %v2400_v53, %v2385_v52 }
0x1742   : > { %v2402_v55 = vadd.f32 %v2401_v54, %v2386_v14 }
0x1744   : > { %v2407_v22 = vpack.c.bf16 %v2402_v55, %v2402_v55 }
0x1746   : > { %2930 = vmatmul.mubr.msk.bf16.vlgmr.msra.gmra.mrb[48].mxu1 %vm1123_vm0, %v2407_v22 }
0x1819   : > { %v2458_v57 = vpop.f32.mrb[48].mxu1 }
0x181a   : > { %v2459_v58 = vadd.f32 %v2458_v57, %v2408_v56  ;;  %v2931_v59 = vpop.f32.mrb[49].mxu1 }
0x181b   : > { %v2461_v60 = vpop.f32.mrb[50].mxu1 }
0x181c   : > { %v2678_v61 = vmul.f32 -1.442695, %v2459_v58  ;;  %v2932_v62 = vpop.f32.mrb[51].mxu1 }
0x181e   : > { %3080 = vpow2.f32 %v2678_v61 }
0x1828   : > { %v3081_v63 = vpop.eup %3080 }
0x1829   : > { %v2467_v27 = vadd.f32 1.0, %v3081_v63 }
0x182b   : > { %3082 = vrcp.f32 %v2467_v27 }
0x1835   : > { %v3083_v0 = vpop.eup %3082 }
0x1836   : > { %2471 = vst.msk [vmem:[%s594_s0] sm:$0x1] %vm2470_vm8, %v3083_v0 }
0x1837   : > { %3097 = shalt.err (!%p3094_p3)
}
0x1838   : > { %s3098_s19 = scalar_lea.hbm %s3742_s21, 16  ;;  %s3102_s22 = scalar_lea.hbm %s3837_s26, 32 }
0x1839   : > { %p3099_p4 = scmp.ne.s32.totalorder %s3742_s21, %s3098_s19  ;;  %p3103_p9 = scmp.lt.u32.totalorder %s3742_s21, %s3837_s26 }
0x183a   : > { %p3104_p10 = scmp.lt.u32.totalorder %s3102_s22, %s3098_s19  ;;  %p3106_p12 = scmp.lt.u32.totalorder %s3098_s19, %s3742_s21 }
0x183b   : > { %p3100_p7 = pnand %p3099_p4, %p3294_p5 }
0x183c   : > { %p3105_p11 = por %p3104_p10, %p3103_p9 }
0x183d   : > { %p3101_p8 = pneg %p3100_p7 }
0x183e   : > { %p3107_p13 = por %p3106_p12, %p3105_p11 }
0x1840   : > { %p3108_p0 = pnand %p3107_p13, %p3101_p8 }
0x1842   : > { %3111 = shalt.err (!%p3108_p0)
}
0x1843   : > { %2934 = dma.vmem_to_hbm [thread:$0]  (%p3294_p5), %s3744_s2, 16, %s3742_s21, %s2473_s24  }
0x1844 PF: > { %s3838_s5 = sld [smem:[#allocation7_spill]]  ;;  %s3839_s20 = sld [smem:[#allocation5_spill]] }
0x184a   : > { %p2940_p1 = scmp.ge.s32.totalorder %s3838_s5, 2  ;;  %s2497_s1 = sand.u32 1, %s3839_s20  }
0x184b   : > { %s2498_s28 = scalar_lea.sflag [#allocation3], %s2497_s1 }
0x184c   : > { %p2937_p2 = pnand %p2940_p1, %p3298_p6 }
0x184e   : > { %3129 = dma.done.wait (!%p2937_p2), %s2498_s28, 16  }
0x184f   : > { %3131 = vsyncadd (!%p2937_p2), %s2498_s28, 4294967280  ;;  %s3841_s21 = sld [smem:[#allocation8_spill]]  ;;  %s3842_s19 = sld [smem:[#allocation6_spill]] }
0x1850   : > { %s3843_s20 = sld [smem:[#allocation9_spill]]  ;;  %s3844_s0 = smov %s3138_s30 }
0x1855   : > { %p29_p3 = scmp.ge.s32.totalorder %s3841_s21, 4   ;;  %s3845_s30 = smov %s3842_s19 }
0x1857   :  { %31 = sbr.rel (!%p29_p3) target bundleno = 11 (0xb), region = 143 }
0x185e   :  { %2502 = vsyncpa [#allocation3], 1 }
0x185f   :  { %2504 = vsyncpa [#allocation3 + $0x1], 1 }

</bundles_post_ra>
